<compile_context>
chip_gen: v7x
topology: tpu7x:2x2x1
jax: 0.10.0
libtpu: 0.0.40
codegen_flags: <defaults>
</compile_context>

<pallas_src>
import jax
import jax.numpy as jnp
from jax import lax
from jax.experimental import pallas as pl
from jax.experimental.pallas import tpu as pltpu

NHEAD = 4
FFN_DIM = 512
LN_EPS = 1e-5
LEAKY_SLOPE = 0.01

# bf16 MXU inputs, f32 accumulation (preferred_element_type).  Flip back to
# jnp.float32 only if a bit-tight comparison against an f32 reference is needed.
MATMUL_DTYPE = jnp.bfloat16


def _mm(a, b):
    return jnp.dot(a.astype(MATMUL_DTYPE), b.astype(MATMUL_DTYPE),
                   preferred_element_type=jnp.float32)


def _layer_norm(x, gamma, beta):
    mu = jnp.mean(x, axis=-1, keepdims=True)
    var = jnp.mean(jnp.square(x - mu), axis=-1, keepdims=True)
    return (x - mu) * lax.rsqrt(var + LN_EPS) * gamma + beta


def _leaky_relu(x):
    return jnp.where(x > 0, x, LEAKY_SLOPE * x)


def graph_transformer_kernel(x_ref, wqkv_ref, wo_ref, w1_ref, w2_ref, vec_ref,
                             out_ref):
    bt, n, d = x_ref.shape
    hd = d // NHEAD                  # true head dim (softmax scale uses this)
    hpd = wo_ref.shape[0]            # NHEAD * padded-head-width
    hp = hpd // NHEAD                # padded per-head width (== hd if unpadded)
    ffn = w1_ref.shape[1]
    scale = 1.0 / float(hd) ** 0.5

    # Fold b_tile graphs into one row-dense activation block.
    # NOTE: the reshape is a layout no-op when n is a multiple of 8 (cc400
    # n=392 and the test n=8 both are).
    x2 = x_ref[...].reshape(bt * n, d)                       # (bt*n, d) f32

    # ---- fused QKV projection: one wide MXU matmul ----
    qkv = _mm(x2, wqkv_ref[...]) + vec_ref[0:1, :3 * hpd]    # (bt*n, 3*hpd)

    # ---- per-head attention (static unroll); no separate q/k/v values ----
    ctx_heads = []
    for h in range(NHEAD):
        lo = h * hp
        qh = qkv[:, lo:lo + hp].reshape(bt, n, hp)
        kh = qkv[:, hpd + lo:hpd + lo + hp].reshape(bt, n, hp)
        vh = qkv[:, 2 * hpd + lo:2 * hpd + lo + hp].reshape(bt, n, hp)
        s = jnp.einsum('bqd,bkd->bqk',
                       qh.astype(MATMUL_DTYPE), kh.astype(MATMUL_DTYPE),
                       preferred_element_type=jnp.float32) * scale
        s = s - jnp.max(s, axis=-1, keepdims=True)
        p = jnp.exp(s)
        p = p * pl.reciprocal(jnp.sum(p, axis=-1, keepdims=True), approx=True)
        ctx_heads.append(
            jnp.einsum('bqk,bkd->bqd',
                       p.astype(MATMUL_DTYPE), vh.astype(MATMUL_DTYPE),
                       preferred_element_type=jnp.float32))
    # Fuse all heads into ONE K=hpd output projection (padded rows of wo are
    # zero, so this is exact).  No zero-initialized accumulator needed.
    ctx = jnp.concatenate(ctx_heads, axis=-1).reshape(bt * n, hpd)
    attn2 = _mm(ctx, wo_ref[...]) + vec_ref[1:2, :d]

    # ---- post-norm encoder layer (PyTorch norm_first=False) ----
    y = _layer_norm(x2 + attn2, vec_ref[2:3, :d], vec_ref[3:4, :d])
    h1 = jnp.maximum(_mm(y, w1_ref[...]) + vec_ref[4:5, :ffn], 0.0)
    ff = _mm(h1, w2_ref[...]) + vec_ref[5:6, :d]
    z = _layer_norm(y + ff, vec_ref[6:7, :d], vec_ref[7:8, :d])

    # ---- readout == 'mean' over nodes; classifier head runs outside ----
    out_ref[...] = jnp.mean(z.reshape(bt, n, d), axis=1, keepdims=True)


# ---------------- wrapper: parameter packing + pallas_call ----------------
def _round_up(v, m):
    return (v + m - 1) // m * m


def _head_pad(hd):
    # Pad per-head slots to full 128-lane groups only when waste <= ~1.33x
    # (cc400 hd=98 -> 128).  Small heads (e.g. hd=8 at D=32) stay unpadded:
    # the hd-granular slice relayout is far cheaper than 16x padded MXU
    # columns and activations.
    hp = _round_up(hd, 128)
    return hp if hp * 3 <= hd * 4 else hd


def _chip_hints():
    try:
        kind = jax.devices()[0].device_kind.lower()
    except Exception:
        kind = ''
    if 'v5' in kind or 'v6' in kind:
        # 128 MiB physical VMEM, single TensorCore: big tiles, no forced split.
        return dict(row_cap=2048, prefer_multi_step=False, vmem_limit=96 << 20)
    if 'v7' in kind or '7x' in kind:
        # 64 MiB VMEM, 2 TensorCores: keep >= 2 grid steps, tighter rows.
        return dict(row_cap=1024, prefer_multi_step=True, vmem_limit=40 << 20)
    # Unknown generation: conservative.
    return dict(row_cap=1024, prefer_multi_step=True, vmem_limit=32 << 20)


def _pick_b_tile(B, N, hints):
    # Fold as many graphs per step as the row cap allows; only require >= 2
    # grid steps on chips that actually have a second TensorCore to shard to.
    best = 1
    for cand in range(2, B + 1):
        if B % cand:
            continue
        if cand * N > hints['row_cap']:
            continue
        if hints['prefer_multi_step'] and B // cand < 2:
            continue
        best = cand
    return best


def _pack_params(p, D):
    f32 = jnp.float32
    hd = D // NHEAD
    hp = _head_pad(hd)
    hpd = NHEAD * hp

    def pad_cols_by_head(w):               # (D, D) -> (D, hpd)
        if hp == hd:
            return w.astype(f32)
        out = jnp.zeros((w.shape[0], hpd), f32)
        for h in range(NHEAD):
            out = out.at[:, h * hp:h * hp + hd].set(w[:, h * hd:(h + 1) * hd])
        return out

    def pad_rows_by_head(w):               # (D, D) -> (hpd, D)
        if hp == hd:
            return w.astype(f32)
        out = jnp.zeros((hpd, w.shape[1]), f32)
        for h in range(NHEAD):
            out = out.at[h * hp:h * hp + hd, :].set(w[h * hd:(h + 1) * hd, :])
        return out

    def pad_vec_by_head(b):                # (1, D) -> (hpd,)
        b = b.reshape(-1)
        if hp == hd:
            return b.astype(f32)
        out = jnp.zeros((hpd,), f32)
        for h in range(NHEAD):
            out = out.at[h * hp:h * hp + hd].set(b[h * hd:(h + 1) * hd])
        return out

    # Resident matmul weights pre-cast to MATMUL_DTYPE (half the DMA / VMEM).
    wqkv = jnp.concatenate([pad_cols_by_head(p['wq']),
                            pad_cols_by_head(p['wk']),
                            pad_cols_by_head(p['wv'])],
                           axis=1).astype(MATMUL_DTYPE)        # (D, 3*hpd)
    wo = pad_rows_by_head(p['wo']).astype(MATMUL_DTYPE)        # (hpd, D)
    w1 = p['w1'].astype(MATMUL_DTYPE)                          # (D, FFN)
    w2 = p['w2'].astype(MATMUL_DTYPE)                          # (FFN, D)

    # One f32 slab for all small bias / LayerNorm vectors (8 rows).
    W = _round_up(max(3 * hpd, D, FFN_DIM), 128)
    vec = jnp.zeros((8, W), f32)
    bqkv = jnp.concatenate([pad_vec_by_head(p['bq']),
                            pad_vec_by_head(p['bk']),
                            pad_vec_by_head(p['bv'])])
    vec = vec.at[0, :3 * hpd].set(bqkv)
    vec = vec.at[1, :D].set(p['bo'].reshape(-1))
    vec = vec.at[2, :D].set(p['ln1_g'].reshape(-1))
    vec = vec.at[3, :D].set(p['ln1_b'].reshape(-1))
    vec = vec.at[4, :FFN_DIM].set(p['b1'].reshape(-1))
    vec = vec.at[5, :D].set(p['b2'].reshape(-1))
    vec = vec.at[6, :D].set(p['ln2_g'].reshape(-1))
    vec = vec.at[7, :D].set(p['ln2_b'].reshape(-1))

    return wqkv, wo, w1, w2, vec


def graph_transformer_forward(x, params, b_tile=None):
    B, N, D = x.shape
    assert D % NHEAD == 0
    hints = _chip_hints()
    if b_tile is None:
        b_tile = _pick_b_tile(B, N, hints)
    assert B % b_tile == 0
    weights = _pack_params(params, D)

    in_specs = [pl.BlockSpec((b_tile, N, D), lambda b: (b, 0, 0))]
    # Weights are small: fully resident, constant index_map -> never re-DMA'd.
    in_specs += [pl.BlockSpec(w.shape, lambda b: (0, 0)) for w in weights]

    pooled = pl.pallas_call(
        graph_transformer_kernel,
        out_shape=jax.ShapeDtypeStruct((B, 1, D), jnp.float32),
        grid=(B // b_tile,),
        in_specs=in_specs,
        out_specs=pl.BlockSpec((b_tile, 1, D), lambda b: (b, 0, 0)),
        compiler_params=pltpu.CompilerParams(
            dimension_semantics=("parallel",),
            vmem_limit_bytes=hints['vmem_limit']),
    )(x, *weights)

    # Classifier head once over the whole batch (M=B) in plain XLA f32,
    # instead of M=b_tile rows on the serial tail of every grid step.
    pooled = pooled.reshape(B, D)
    a1 = _leaky_relu(pooled @ params['fw1'] + params['fb1'])
    a2 = _leaky_relu(a1 @ params['fw2'] + params['fb2'])
    return a2 @ params['fw3'] + params['fb3']


# ---- pure-JAX reference (independent code path, for correctness check) ----
def reference_forward(x, p):
    B, N, D = x.shape
    hd = D // NHEAD
    q = x @ p['wq'] + p['bq']
    k = x @ p['wk'] + p['bk']
    v = x @ p['wv'] + p['bv']
    qh = q.reshape(B, N, NHEAD, hd).transpose(0, 2, 1, 3)
    kh = k.reshape(B, N, NHEAD, hd).transpose(0, 2, 1, 3)
    vh = v.reshape(B, N, NHEAD, hd).transpose(0, 2, 1, 3)
    s = jnp.einsum('bhqd,bhkd->bhqk', qh, kh) / (hd ** 0.5)
    a = jax.nn.softmax(s, axis=-1)
    ctx = jnp.einsum('bhqk,bhkd->bhqd', a, vh).transpose(0, 2, 1, 3).reshape(B, N, D)
    attn = ctx @ p['wo'] + p['bo']

    def ln(t, g, bb):
        mu = t.mean(-1, keepdims=True)
        var = ((t - mu) ** 2).mean(-1, keepdims=True)
        return (t - mu) / jnp.sqrt(var + LN_EPS) * g + bb

    y = ln(x + attn, p['ln1_g'], p['ln1_b'])
    ff = jax.nn.relu(y @ p['w1'] + p['b1']) @ p['w2'] + p['b2']
    z = ln(y + ff, p['ln2_g'], p['ln2_b'])
    pooled = z.mean(axis=1)

    def lrelu(t):
        return jnp.where(t > 0, t, LEAKY_SLOPE * t)

    a1 = lrelu(pooled @ p['fw1'] + p['fb1'])
    a2 = lrelu(a1 @ p['fw2'] + p['fb2'])
    return a2 @ p['fw3'] + p['fb3']


def init_params(key, D):
    ks = jax.random.split(key, 24)
    scale = 0.05

    def w(k, shape):
        return (scale * jax.random.normal(k, shape)).astype(jnp.float32)

    return {
        'wq': w(ks[0], (D, D)),   'bq': w(ks[1], (1, D)),
        'wk': w(ks[2], (D, D)),   'bk': w(ks[3], (1, D)),
        'wv': w(ks[4], (D, D)),   'bv': w(ks[5], (1, D)),
        'wo': w(ks[6], (D, D)),   'bo': w(ks[7], (1, D)),
        'ln1_g': 1.0 + w(ks[15], (1, D)), 'ln1_b': w(ks[16], (1, D)),
        'w1': w(ks[8], (D, FFN_DIM)),  'b1': w(ks[9], (1, FFN_DIM)),
        'w2': w(ks[10], (FFN_DIM, D)), 'b2': w(ks[11], (1, D)),
        'ln2_g': 1.0 + w(ks[17], (1, D)), 'ln2_b': w(ks[18], (1, D)),
        'fw1': w(ks[12], (D, 256)),  'fb1': w(ks[19], (1, 256)),
        'fw2': w(ks[13], (256, 32)), 'fb2': w(ks[20], (1, 32)),
        'fw3': w(ks[14], (32, 2)),   'fb3': w(ks[21], (1, 2)),
    }


if __name__ == "__main__":
    # small shapes: batch=4, 8 nodes, 32 node features (divisible by nhead=4)
    B, N, D = 4, 8, 32
    key = jax.random.PRNGKey(0)
    kx, kp = jax.random.split(key)
    x = jax.random.normal(kx, (B, N, D), jnp.float32)
    params = init_params(kp, D)

    out = jax.block_until_ready(graph_transformer_forward(x, params))
    ref = reference_forward(x, params)
    assert out.shape == (B, 2)
    # bf16 MXU inputs + EUP approx reciprocal in the softmax denominator vs a
    # pure-f32 reference -> modest tolerance.
    err = float(jnp.max(jnp.abs(out - ref)))
    assert jnp.allclose(out, ref, atol=2e-2, rtol=2e-2), err
    print("KERNEL_OK")
</pallas_src>

<mosaic_0001>
module attributes {stable_mosaic.version = 11 : i64} {
  func.func @graph_transformer_kernel(%arg0: i32, %arg1: memref<2x8x32xf32, #tpu.memory_space<vmem>>, %arg2: memref<32x96xbf16, #tpu.memory_space<vmem>>, %arg3: memref<32x32xbf16, #tpu.memory_space<vmem>>, %arg4: memref<32x512xbf16, #tpu.memory_space<vmem>>, %arg5: memref<512x32xbf16, #tpu.memory_space<vmem>>, %arg6: memref<8x512xf32, #tpu.memory_space<vmem>>, %arg7: memref<2x1x32xf32, #tpu.memory_space<vmem>>) attributes {dimension_semantics = [#tpu.dimension_semantics<parallel>], iteration_bounds = array<i64: 2>, scalar_prefetch = 0 : i64, scratch_operands = 0 : i64, tpu.core_type = #tpu.core_type<tc>, window_params = [{transform_indices = @transform_0, window_bounds = array<i64: 2, 8, 32>}, {pipeline_mode = #tpu.pipeline_mode<synchronous>, transform_indices = @transform_1, window_bounds = array<i64: 32, 96>}, {pipeline_mode = #tpu.pipeline_mode<synchronous>, transform_indices = @transform_2, window_bounds = array<i64: 32, 32>}, {pipeline_mode = #tpu.pipeline_mode<synchronous>, transform_indices = @transform_3, window_bounds = array<i64: 32, 512>}, {pipeline_mode = #tpu.pipeline_mode<synchronous>, transform_indices = @transform_4, window_bounds = array<i64: 512, 32>}, {pipeline_mode = #tpu.pipeline_mode<synchronous>, transform_indices = @transform_5, window_bounds = array<i64: 8, 512>}, {transform_indices = @transform_6, window_bounds = array<i64: 2, 1, 32>}]} {
    %c0 = arith.constant 0 : index
    %c0_0 = arith.constant 0 : index
    %c0_1 = arith.constant 0 : index
    %0 = vector.load %arg1[%c0, %c0_0, %c0_1] : memref<2x8x32xf32, #tpu.memory_space<vmem>>, vector<2x8x32xf32>
    %1 = vector.shape_cast %0 : vector<2x8x32xf32> to vector<16x32xf32>
    %c0_2 = arith.constant 0 : index
    %c0_3 = arith.constant 0 : index
    %2 = vector.load %arg2[%c0_2, %c0_3] : memref<32x96xbf16, #tpu.memory_space<vmem>>, vector<32x96xbf16>
    %3 = arith.truncf %1 : vector<16x32xf32> to vector<16x32xbf16>
    %cst = arith.constant dense<0.000000e+00> : vector<16x96xf32>
    %4 = tpu.matmul %3, %2, %cst {dimension_numbers = #tpu.dot_dimension_numbers<[1], [0], [0], [1], [0, 0, 1, 1], [], []>} : vector<16x32xbf16>, vector<32x96xbf16>, vector<16x96xf32> -> vector<16x96xf32>
    %c0_4 = arith.constant 0 : index
    %c0_5 = arith.constant 0 : index
    %5 = vector.load %arg6[%c0_4, %c0_5] : memref<8x512xf32, #tpu.memory_space<vmem>>, vector<1x96xf32>
    %6 = vector.broadcast %5 : vector<1x96xf32> to vector<16x96xf32>
    %7 = arith.addf %4, %6 : vector<16x96xf32>
    %8 = vector.extract_strided_slice %7 {offsets = [0, 0], sizes = [16, 8], strides = [1, 1]} : vector<16x96xf32> to vector<16x8xf32>
    %9 = vector.shape_cast %8 : vector<16x8xf32> to vector<2x8x8xf32>
    %10 = vector.extract_strided_slice %7 {offsets = [0, 32], sizes = [16, 8], strides = [1, 1]} : vector<16x96xf32> to vector<16x8xf32>
    %11 = vector.shape_cast %10 : vector<16x8xf32> to vector<2x8x8xf32>
    %12 = vector.extract_strided_slice %7 {offsets = [0, 64], sizes = [16, 8], strides = [1, 1]} : vector<16x96xf32> to vector<16x8xf32>
    %13 = vector.shape_cast %12 : vector<16x8xf32> to vector<2x8x8xf32>
    %14 = arith.truncf %9 : vector<2x8x8xf32> to vector<2x8x8xbf16>
    %15 = arith.truncf %11 : vector<2x8x8xf32> to vector<2x8x8xbf16>
    "tpu.trace_start"() <{level = 10 : i32, message = "bqd,bkd->bqk"}> : () -> ()
    %cst_6 = arith.constant dense<0.000000e+00> : vector<2x8x8xf32>
    %16 = tpu.matmul %14, %15, %cst_6 {dimension_numbers = #tpu.dot_dimension_numbers<[2], [2], [1], [1], [0, 0, 0, 1, 1, 1], [0], [0]>} : vector<2x8x8xbf16>, vector<2x8x8xbf16>, vector<2x8x8xf32> -> vector<2x8x8xf32>
    "tpu.trace_stop"() : () -> ()
    %cst_7 = arith.constant 0.353553385 : f32
    %17 = vector.broadcast %cst_7 : f32 to vector<2x8x8xf32>
    %18 = arith.mulf %16, %17 : vector<2x8x8xf32>
    %cst_8 = arith.constant dense<0xFF800000> : vector<2x8xf32>
    %19 = vector.multi_reduction <maximumf>, %18, %cst_8 [2] : vector<2x8x8xf32> to vector<2x8xf32>
    %20 = vector.shape_cast %19 : vector<2x8xf32> to vector<2x8x1xf32>
    %21 = vector.broadcast %20 : vector<2x8x1xf32> to vector<2x8x8xf32>
    %22 = arith.subf %18, %21 : vector<2x8x8xf32>
    %23 = math.exp %22 : vector<2x8x8xf32>
    %cst_9 = arith.constant dense<0.000000e+00> : vector<2x8xf32>
    %24 = vector.multi_reduction <add>, %23, %cst_9 [2] : vector<2x8x8xf32> to vector<2x8xf32>
    %25 = vector.shape_cast %24 : vector<2x8xf32> to vector<2x8x1xf32>
    %26 = tpu.reciprocal %25 {approx = true} : vector<2x8x1xf32> -> vector<2x8x1xf32>
    %27 = vector.broadcast %26 : vector<2x8x1xf32> to vector<2x8x8xf32>
    %28 = arith.mulf %23, %27 : vector<2x8x8xf32>
    %29 = arith.truncf %28 : vector<2x8x8xf32> to vector<2x8x8xbf16>
    %30 = arith.truncf %13 : vector<2x8x8xf32> to vector<2x8x8xbf16>
    "tpu.trace_start"() <{level = 10 : i32, message = "bqk,bkd->bqd"}> : () -> ()
    %cst_10 = arith.constant dense<0.000000e+00> : vector<2x8x8xf32>
    %31 = tpu.matmul %29, %30, %cst_10 {dimension_numbers = #tpu.dot_dimension_numbers<[2], [1], [1], [2], [0, 0, 0, 1, 1, 2], [0], [0]>} : vector<2x8x8xbf16>, vector<2x8x8xbf16>, vector<2x8x8xf32> -> vector<2x8x8xf32>
    "tpu.trace_stop"() : () -> ()
    %32 = vector.extract_strided_slice %7 {offsets = [0, 8], sizes = [16, 8], strides = [1, 1]} : vector<16x96xf32> to vector<16x8xf32>
    %33 = vector.shape_cast %32 : vector<16x8xf32> to vector<2x8x8xf32>
    %34 = vector.extract_strided_slice %7 {offsets = [0, 40], sizes = [16, 8], strides = [1, 1]} : vector<16x96xf32> to vector<16x8xf32>
    %35 = vector.shape_cast %34 : vector<16x8xf32> to vector<2x8x8xf32>
    %36 = vector.extract_strided_slice %7 {offsets = [0, 72], sizes = [16, 8], strides = [1, 1]} : vector<16x96xf32> to vector<16x8xf32>
    %37 = vector.shape_cast %36 : vector<16x8xf32> to vector<2x8x8xf32>
    %38 = arith.truncf %33 : vector<2x8x8xf32> to vector<2x8x8xbf16>
    %39 = arith.truncf %35 : vector<2x8x8xf32> to vector<2x8x8xbf16>
    "tpu.trace_start"() <{level = 10 : i32, message = "bqd,bkd->bqk"}> : () -> ()
    %cst_11 = arith.constant dense<0.000000e+00> : vector<2x8x8xf32>
    %40 = tpu.matmul %38, %39, %cst_11 {dimension_numbers = #tpu.dot_dimension_numbers<[2], [2], [1], [1], [0, 0, 0, 1, 1, 1], [0], [0]>} : vector<2x8x8xbf16>, vector<2x8x8xbf16>, vector<2x8x8xf32> -> vector<2x8x8xf32>
    "tpu.trace_stop"() : () -> ()
    %cst_12 = arith.constant 0.353553385 : f32
    %41 = vector.broadcast %cst_12 : f32 to vector<2x8x8xf32>
    %42 = arith.mulf %40, %41 : vector<2x8x8xf32>
    %cst_13 = arith.constant dense<0xFF800000> : vector<2x8xf32>
    %43 = vector.multi_reduction <maximumf>, %42, %cst_13 [2] : vector<2x8x8xf32> to vector<2x8xf32>
    %44 = vector.shape_cast %43 : vector<2x8xf32> to vector<2x8x1xf32>
    %45 = vector.broadcast %44 : vector<2x8x1xf32> to vector<2x8x8xf32>
    %46 = arith.subf %42, %45 : vector<2x8x8xf32>
    %47 = math.exp %46 : vector<2x8x8xf32>
    %cst_14 = arith.constant dense<0.000000e+00> : vector<2x8xf32>
    %48 = vector.multi_reduction <add>, %47, %cst_14 [2] : vector<2x8x8xf32> to vector<2x8xf32>
    %49 = vector.shape_cast %48 : vector<2x8xf32> to vector<2x8x1xf32>
    %50 = tpu.reciprocal %49 {approx = true} : vector<2x8x1xf32> -> vector<2x8x1xf32>
    %51 = vector.broadcast %50 : vector<2x8x1xf32> to vector<2x8x8xf32>
    %52 = arith.mulf %47, %51 : vector<2x8x8xf32>
    %53 = arith.truncf %52 : vector<2x8x8xf32> to vector<2x8x8xbf16>
    %54 = arith.truncf %37 : vector<2x8x8xf32> to vector<2x8x8xbf16>
    "tpu.trace_start"() <{level = 10 : i32, message = "bqk,bkd->bqd"}> : () -> ()
    %cst_15 = arith.constant dense<0.000000e+00> : vector<2x8x8xf32>
    %55 = tpu.matmul %53, %54, %cst_15 {dimension_numbers = #tpu.dot_dimension_numbers<[2], [1], [1], [2], [0, 0, 0, 1, 1, 2], [0], [0]>} : vector<2x8x8xbf16>, vector<2x8x8xbf16>, vector<2x8x8xf32> -> vector<2x8x8xf32>
    "tpu.trace_stop"() : () -> ()
    %56 = vector.extract_strided_slice %7 {offsets = [0, 16], sizes = [16, 8], strides = [1, 1]} : vector<16x96xf32> to vector<16x8xf32>
    %57 = vector.shape_cast %56 : vector<16x8xf32> to vector<2x8x8xf32>
    %58 = vector.extract_strided_slice %7 {offsets = [0, 48], sizes = [16, 8], strides = [1, 1]} : vector<16x96xf32> to vector<16x8xf32>
    %59 = vector.shape_cast %58 : vector<16x8xf32> to vector<2x8x8xf32>
    %60 = vector.extract_strided_slice %7 {offsets = [0, 80], sizes = [16, 8], strides = [1, 1]} : vector<16x96xf32> to vector<16x8xf32>
    %61 = vector.shape_cast %60 : vector<16x8xf32> to vector<2x8x8xf32>
    %62 = arith.truncf %57 : vector<2x8x8xf32> to vector<2x8x8xbf16>
    %63 = arith.truncf %59 : vector<2x8x8xf32> to vector<2x8x8xbf16>
    "tpu.trace_start"() <{level = 10 : i32, message = "bqd,bkd->bqk"}> : () -> ()
    %cst_16 = arith.constant dense<0.000000e+00> : vector<2x8x8xf32>
    %64 = tpu.matmul %62, %63, %cst_16 {dimension_numbers = #tpu.dot_dimension_numbers<[2], [2], [1], [1], [0, 0, 0, 1, 1, 1], [0], [0]>} : vector<2x8x8xbf16>, vector<2x8x8xbf16>, vector<2x8x8xf32> -> vector<2x8x8xf32>
    "tpu.trace_stop"() : () -> ()
    %cst_17 = arith.constant 0.353553385 : f32
    %65 = vector.broadcast %cst_17 : f32 to vector<2x8x8xf32>
    %66 = arith.mulf %64, %65 : vector<2x8x8xf32>
    %cst_18 = arith.constant dense<0xFF800000> : vector<2x8xf32>
    %67 = vector.multi_reduction <maximumf>, %66, %cst_18 [2] : vector<2x8x8xf32> to vector<2x8xf32>
    %68 = vector.shape_cast %67 : vector<2x8xf32> to vector<2x8x1xf32>
    %69 = vector.broadcast %68 : vector<2x8x1xf32> to vector<2x8x8xf32>
    %70 = arith.subf %66, %69 : vector<2x8x8xf32>
    %71 = math.exp %70 : vector<2x8x8xf32>
    %cst_19 = arith.constant dense<0.000000e+00> : vector<2x8xf32>
    %72 = vector.multi_reduction <add>, %71, %cst_19 [2] : vector<2x8x8xf32> to vector<2x8xf32>
    %73 = vector.shape_cast %72 : vector<2x8xf32> to vector<2x8x1xf32>
    %74 = tpu.reciprocal %73 {approx = true} : vector<2x8x1xf32> -> vector<2x8x1xf32>
    %75 = vector.broadcast %74 : vector<2x8x1xf32> to vector<2x8x8xf32>
    %76 = arith.mulf %71, %75 : vector<2x8x8xf32>
    %77 = arith.truncf %76 : vector<2x8x8xf32> to vector<2x8x8xbf16>
    %78 = arith.truncf %61 : vector<2x8x8xf32> to vector<2x8x8xbf16>
    "tpu.trace_start"() <{level = 10 : i32, message = "bqk,bkd->bqd"}> : () -> ()
    %cst_20 = arith.constant dense<0.000000e+00> : vector<2x8x8xf32>
    %79 = tpu.matmul %77, %78, %cst_20 {dimension_numbers = #tpu.dot_dimension_numbers<[2], [1], [1], [2], [0, 0, 0, 1, 1, 2], [0], [0]>} : vector<2x8x8xbf16>, vector<2x8x8xbf16>, vector<2x8x8xf32> -> vector<2x8x8xf32>
    "tpu.trace_stop"() : () -> ()
    %80 = vector.extract_strided_slice %7 {offsets = [0, 24], sizes = [16, 8], strides = [1, 1]} : vector<16x96xf32> to vector<16x8xf32>
    %81 = vector.shape_cast %80 : vector<16x8xf32> to vector<2x8x8xf32>
    %82 = vector.extract_strided_slice %7 {offsets = [0, 56], sizes = [16, 8], strides = [1, 1]} : vector<16x96xf32> to vector<16x8xf32>
    %83 = vector.shape_cast %82 : vector<16x8xf32> to vector<2x8x8xf32>
    %84 = vector.extract_strided_slice %7 {offsets = [0, 88], sizes = [16, 8], strides = [1, 1]} : vector<16x96xf32> to vector<16x8xf32>
    %85 = vector.shape_cast %84 : vector<16x8xf32> to vector<2x8x8xf32>
    %86 = arith.truncf %81 : vector<2x8x8xf32> to vector<2x8x8xbf16>
    %87 = arith.truncf %83 : vector<2x8x8xf32> to vector<2x8x8xbf16>
    "tpu.trace_start"() <{level = 10 : i32, message = "bqd,bkd->bqk"}> : () -> ()
    %cst_21 = arith.constant dense<0.000000e+00> : vector<2x8x8xf32>
    %88 = tpu.matmul %86, %87, %cst_21 {dimension_numbers = #tpu.dot_dimension_numbers<[2], [2], [1], [1], [0, 0, 0, 1, 1, 1], [0], [0]>} : vector<2x8x8xbf16>, vector<2x8x8xbf16>, vector<2x8x8xf32> -> vector<2x8x8xf32>
    "tpu.trace_stop"() : () -> ()
    %cst_22 = arith.constant 0.353553385 : f32
    %89 = vector.broadcast %cst_22 : f32 to vector<2x8x8xf32>
    %90 = arith.mulf %88, %89 : vector<2x8x8xf32>
    %cst_23 = arith.constant dense<0xFF800000> : vector<2x8xf32>
    %91 = vector.multi_reduction <maximumf>, %90, %cst_23 [2] : vector<2x8x8xf32> to vector<2x8xf32>
    %92 = vector.shape_cast %91 : vector<2x8xf32> to vector<2x8x1xf32>
    %93 = vector.broadcast %92 : vector<2x8x1xf32> to vector<2x8x8xf32>
    %94 = arith.subf %90, %93 : vector<2x8x8xf32>
    %95 = math.exp %94 : vector<2x8x8xf32>
    %cst_24 = arith.constant dense<0.000000e+00> : vector<2x8xf32>
    %96 = vector.multi_reduction <add>, %95, %cst_24 [2] : vector<2x8x8xf32> to vector<2x8xf32>
    %97 = vector.shape_cast %96 : vector<2x8xf32> to vector<2x8x1xf32>
    %98 = tpu.reciprocal %97 {approx = true} : vector<2x8x1xf32> -> vector<2x8x1xf32>
    %99 = vector.broadcast %98 : vector<2x8x1xf32> to vector<2x8x8xf32>
    %100 = arith.mulf %95, %99 : vector<2x8x8xf32>
    %101 = arith.truncf %100 : vector<2x8x8xf32> to vector<2x8x8xbf16>
    %102 = arith.truncf %85 : vector<2x8x8xf32> to vector<2x8x8xbf16>
    "tpu.trace_start"() <{level = 10 : i32, message = "bqk,bkd->bqd"}> : () -> ()
    %cst_25 = arith.constant dense<0.000000e+00> : vector<2x8x8xf32>
    %103 = tpu.matmul %101, %102, %cst_25 {dimension_numbers = #tpu.dot_dimension_numbers<[2], [1], [1], [2], [0, 0, 0, 1, 1, 2], [0], [0]>} : vector<2x8x8xbf16>, vector<2x8x8xbf16>, vector<2x8x8xf32> -> vector<2x8x8xf32>
    "tpu.trace_stop"() : () -> ()
    %104 = tpu.concatenate %31, %55, %79, %103 in 2 : vector<2x8x8xf32>, vector<2x8x8xf32>, vector<2x8x8xf32>, vector<2x8x8xf32> -> vector<2x8x32xf32>
    %105 = vector.shape_cast %104 : vector<2x8x32xf32> to vector<16x32xf32>
    %c0_26 = arith.constant 0 : index
    %c0_27 = arith.constant 0 : index
    %106 = vector.load %arg3[%c0_26, %c0_27] : memref<32x32xbf16, #tpu.memory_space<vmem>>, vector<32x32xbf16>
    %107 = arith.truncf %105 : vector<16x32xf32> to vector<16x32xbf16>
    %cst_28 = arith.constant dense<0.000000e+00> : vector<16x32xf32>
    %108 = tpu.matmul %107, %106, %cst_28 {dimension_numbers = #tpu.dot_dimension_numbers<[1], [0], [0], [1], [0, 0, 1, 1], [], []>} : vector<16x32xbf16>, vector<32x32xbf16>, vector<16x32xf32> -> vector<16x32xf32>
    %c1 = arith.constant 1 : index
    %c0_29 = arith.constant 0 : index
    %109 = vector.load %arg6[%c1, %c0_29] : memref<8x512xf32, #tpu.memory_space<vmem>>, vector<1x32xf32>
    %110 = vector.broadcast %109 : vector<1x32xf32> to vector<16x32xf32>
    %111 = arith.addf %108, %110 : vector<16x32xf32>
    %112 = arith.addf %1, %111 : vector<16x32xf32>
    %c2 = arith.constant 2 : index
    %c0_30 = arith.constant 0 : index
    %113 = vector.load %arg6[%c2, %c0_30] : memref<8x512xf32, #tpu.memory_space<vmem>>, vector<1x32xf32>
    %c3 = arith.constant 3 : index
    %c0_31 = arith.constant 0 : index
    %114 = vector.load %arg6[%c3, %c0_31] : memref<8x512xf32, #tpu.memory_space<vmem>>, vector<1x32xf32>
    %cst_32 = arith.constant dense<0.000000e+00> : vector<16xf32>
    %115 = vector.multi_reduction <add>, %112, %cst_32 [1] : vector<16x32xf32> to vector<16xf32>
    %116 = vector.shape_cast %115 : vector<16xf32> to vector<16x1xf32>
    %cst_33 = arith.constant 3.200000e+01 : f32
    %117 = vector.broadcast %cst_33 : f32 to vector<16x1xf32>
    %118 = arith.divf %116, %117 : vector<16x1xf32>
    %119 = vector.broadcast %118 : vector<16x1xf32> to vector<16x32xf32>
    %120 = arith.subf %112, %119 : vector<16x32xf32>
    %121 = arith.mulf %120, %120 : vector<16x32xf32>
    %cst_34 = arith.constant dense<0.000000e+00> : vector<16xf32>
    %122 = vector.multi_reduction <add>, %121, %cst_34 [1] : vector<16x32xf32> to vector<16xf32>
    %123 = vector.shape_cast %122 : vector<16xf32> to vector<16x1xf32>
    %cst_35 = arith.constant 3.200000e+01 : f32
    %124 = vector.broadcast %cst_35 : f32 to vector<16x1xf32>
    %125 = arith.divf %123, %124 : vector<16x1xf32>
    %126 = vector.broadcast %118 : vector<16x1xf32> to vector<16x32xf32>
    %127 = arith.subf %112, %126 : vector<16x32xf32>
    %cst_36 = arith.constant 9.99999974E-6 : f32
    %128 = vector.broadcast %cst_36 : f32 to vector<16x1xf32>
    %129 = arith.addf %125, %128 : vector<16x1xf32>
    %130 = math.rsqrt %129 : vector<16x1xf32>
    %131 = vector.broadcast %130 : vector<16x1xf32> to vector<16x32xf32>
    %132 = arith.mulf %127, %131 : vector<16x32xf32>
    %133 = vector.broadcast %113 : vector<1x32xf32> to vector<16x32xf32>
    %134 = arith.mulf %132, %133 : vector<16x32xf32>
    %135 = vector.broadcast %114 : vector<1x32xf32> to vector<16x32xf32>
    %136 = arith.addf %134, %135 : vector<16x32xf32>
    %c0_37 = arith.constant 0 : index
    %c0_38 = arith.constant 0 : index
    %137 = vector.load %arg4[%c0_37, %c0_38] : memref<32x512xbf16, #tpu.memory_space<vmem>>, vector<32x512xbf16>
    %138 = arith.truncf %136 : vector<16x32xf32> to vector<16x32xbf16>
    %cst_39 = arith.constant dense<0.000000e+00> : vector<16x512xf32>
    %139 = tpu.matmul %138, %137, %cst_39 {dimension_numbers = #tpu.dot_dimension_numbers<[1], [0], [0], [1], [0, 0, 1, 1], [], []>} : vector<16x32xbf16>, vector<32x512xbf16>, vector<16x512xf32> -> vector<16x512xf32>
    %c4 = arith.constant 4 : index
    %c0_40 = arith.constant 0 : index
    %140 = vector.load %arg6[%c4, %c0_40] : memref<8x512xf32, #tpu.memory_space<vmem>>, vector<1x512xf32>
    %141 = vector.broadcast %140 : vector<1x512xf32> to vector<16x512xf32>
    %142 = arith.addf %139, %141 : vector<16x512xf32>
    %cst_41 = arith.constant 0.000000e+00 : f32
    %143 = vector.broadcast %cst_41 : f32 to vector<16x512xf32>
    %144 = arith.maximumf %142, %143 : vector<16x512xf32>
    %c0_42 = arith.constant 0 : index
    %c0_43 = arith.constant 0 : index
    %145 = vector.load %arg5[%c0_42, %c0_43] : memref<512x32xbf16, #tpu.memory_space<vmem>>, vector<512x32xbf16>
    %146 = arith.truncf %144 : vector<16x512xf32> to vector<16x512xbf16>
    %cst_44 = arith.constant dense<0.000000e+00> : vector<16x32xf32>
    %147 = tpu.matmul %146, %145, %cst_44 {dimension_numbers = #tpu.dot_dimension_numbers<[1], [0], [0], [1], [0, 0, 1, 1], [], []>} : vector<16x512xbf16>, vector<512x32xbf16>, vector<16x32xf32> -> vector<16x32xf32>
    %c5 = arith.constant 5 : index
    %c0_45 = arith.constant 0 : index
    %148 = vector.load %arg6[%c5, %c0_45] : memref<8x512xf32, #tpu.memory_space<vmem>>, vector<1x32xf32>
    %149 = vector.broadcast %148 : vector<1x32xf32> to vector<16x32xf32>
    %150 = arith.addf %147, %149 : vector<16x32xf32>
    %151 = arith.addf %136, %150 : vector<16x32xf32>
    %c6 = arith.constant 6 : index
    %c0_46 = arith.constant 0 : index
    %152 = vector.load %arg6[%c6, %c0_46] : memref<8x512xf32, #tpu.memory_space<vmem>>, vector<1x32xf32>
    %c7 = arith.constant 7 : index
    %c0_47 = arith.constant 0 : index
    %153 = vector.load %arg6[%c7, %c0_47] : memref<8x512xf32, #tpu.memory_space<vmem>>, vector<1x32xf32>
    %cst_48 = arith.constant dense<0.000000e+00> : vector<16xf32>
    %154 = vector.multi_reduction <add>, %151, %cst_48 [1] : vector<16x32xf32> to vector<16xf32>
    %155 = vector.shape_cast %154 : vector<16xf32> to vector<16x1xf32>
    %cst_49 = arith.constant 3.200000e+01 : f32
    %156 = vector.broadcast %cst_49 : f32 to vector<16x1xf32>
    %157 = arith.divf %155, %156 : vector<16x1xf32>
    %158 = vector.broadcast %157 : vector<16x1xf32> to vector<16x32xf32>
    %159 = arith.subf %151, %158 : vector<16x32xf32>
    %160 = arith.mulf %159, %159 : vector<16x32xf32>
    %cst_50 = arith.constant dense<0.000000e+00> : vector<16xf32>
    %161 = vector.multi_reduction <add>, %160, %cst_50 [1] : vector<16x32xf32> to vector<16xf32>
    %162 = vector.shape_cast %161 : vector<16xf32> to vector<16x1xf32>
    %cst_51 = arith.constant 3.200000e+01 : f32
    %163 = vector.broadcast %cst_51 : f32 to vector<16x1xf32>
    %164 = arith.divf %162, %163 : vector<16x1xf32>
    %165 = vector.broadcast %157 : vector<16x1xf32> to vector<16x32xf32>
    %166 = arith.subf %151, %165 : vector<16x32xf32>
    %cst_52 = arith.constant 9.99999974E-6 : f32
    %167 = vector.broadcast %cst_52 : f32 to vector<16x1xf32>
    %168 = arith.addf %164, %167 : vector<16x1xf32>
    %169 = math.rsqrt %168 : vector<16x1xf32>
    %170 = vector.broadcast %169 : vector<16x1xf32> to vector<16x32xf32>
    %171 = arith.mulf %166, %170 : vector<16x32xf32>
    %172 = vector.broadcast %152 : vector<1x32xf32> to vector<16x32xf32>
    %173 = arith.mulf %171, %172 : vector<16x32xf32>
    %174 = vector.broadcast %153 : vector<1x32xf32> to vector<16x32xf32>
    %175 = arith.addf %173, %174 : vector<16x32xf32>
    %176 = vector.shape_cast %175 : vector<16x32xf32> to vector<2x8x32xf32>
    %cst_53 = arith.constant dense<0.000000e+00> : vector<2x32xf32>
    %177 = vector.multi_reduction <add>, %176, %cst_53 [1] : vector<2x8x32xf32> to vector<2x32xf32>
    %178 = vector.shape_cast %177 : vector<2x32xf32> to vector<2x1x32xf32>
    %cst_54 = arith.constant 8.000000e+00 : f32
    %179 = vector.broadcast %cst_54 : f32 to vector<2x1x32xf32>
    %180 = arith.divf %178, %179 : vector<2x1x32xf32>
    %c0_55 = arith.constant 0 : index
    %c0_56 = arith.constant 0 : index
    %c0_57 = arith.constant 0 : index
    %181 = vector.load %arg7[%c0_55, %c0_56, %c0_57] : memref<2x1x32xf32, #tpu.memory_space<vmem>>, vector<2x1x32xf32>
    tpu.vector_store %arg7[%c0_55, %c0_56, %c0_57], %180 {strides = array<i32>} : memref<2x1x32xf32, #tpu.memory_space<vmem>>, vector<2x1x32xf32>,
    return
  }
  func.func @transform_0(%arg0: i32) -> (i32, i32, i32) {
    %c0_i32 = arith.constant 0 : i32
    %c0_i32_0 = arith.constant 0 : i32
    %c0_i32_1 = arith.constant 0 : i32
    return %arg0, %c0_i32, %c0_i32_0 : i32, i32, i32
  }
  func.func @transform_1(%arg0: i32) -> (i32, i32) {
    %c0_i32 = arith.constant 0 : i32
    %c0_i32_0 = arith.constant 0 : i32
    %c0_i32_1 = arith.constant 0 : i32
    return %c0_i32, %c0_i32_0 : i32, i32
  }
  func.func @transform_2(%arg0: i32) -> (i32, i32) {
    %c0_i32 = arith.constant 0 : i32
    %c0_i32_0 = arith.constant 0 : i32
    %c0_i32_1 = arith.constant 0 : i32
    return %c0_i32, %c0_i32_0 : i32, i32
  }
  func.func @transform_3(%arg0: i32) -> (i32, i32) {
    %c0_i32 = arith.constant 0 : i32
    %c0_i32_0 = arith.constant 0 : i32
    %c0_i32_1 = arith.constant 0 : i32
    return %c0_i32, %c0_i32_0 : i32, i32
  }
  func.func @transform_4(%arg0: i32) -> (i32, i32) {
    %c0_i32 = arith.constant 0 : i32
    %c0_i32_0 = arith.constant 0 : i32
    %c0_i32_1 = arith.constant 0 : i32
    return %c0_i32, %c0_i32_0 : i32, i32
  }
  func.func @transform_5(%arg0: i32) -> (i32, i32) {
    %c0_i32 = arith.constant 0 : i32
    %c0_i32_0 = arith.constant 0 : i32
    %c0_i32_1 = arith.constant 0 : i32
    return %c0_i32, %c0_i32_0 : i32, i32
  }
  func.func @transform_6(%arg0: i32) -> (i32, i32, i32) {
    %c0_i32 = arith.constant 0 : i32
    %c0_i32_0 = arith.constant 0 : i32
    %c0_i32_1 = arith.constant 0 : i32
    return %arg0, %c0_i32, %c0_i32_0 : i32, i32, i32
  }
}

</mosaic_0001>

<bundles_post_ra>
// kernel: tpu_custom_call.1
= control target key start
LH: loop header
LB: loop body
LE: loop exit
PB: predicated region body
PF: predicated region fallthrough
CT: control target
= control target key end

     0   :  { %11 = vsyncpa [#allocation3], 0  ;;  %s2970_s0 = inlined_call_operand.vmem [shape: f32[4,8,32], index: 0, kind: input, shape index: {}]   ;;  %s2971_s1 = inlined_call_operand.vmem [shape: bf16[32,96], index: 1, kind: input, shape index: {}]   ;;  %s2972_s2 = inlined_call_operand.vmem [shape: bf16[32,32], index: 2, kind: input, shape index: {}]   ;;  %s2973_s3 = inlined_call_operand.vmem [shape: bf16[32,512], index: 3, kind: input, shape index: {}]   ;;  %s2974_s4 = inlined_call_operand.vmem [shape: bf16[512,32], index: 4, kind: input, shape index: {}]   ;;  %s2975_s5 = inlined_call_operand.vmem [shape: f32[8,512], index: 5, kind: input, shape index: {}]   ;;  %s2976_s6 = inlined_call_operand.hbm [shape: f32[4,1,32], index: 6, kind: output, shape index: {}]  }
   0x1   :  { %13 = vsyncpa [#allocation3 + $0x1], 0  ;;  %s2530_s21 = smov 0   ;;  %s2532_s22 = smov 0  }
   0x2   :  { %s2534_s23 = smov 0   ;;  %s2536_s24 = smov 0  }
   0x3 LB: > { %s2551_s25 = sadd.s32 4294967295, %s2474_s24   ;;  %s1980_s26 = sadd.s32 4294967294, %s2474_s24   ;;  %s2474_s24 = sphi %s2536_s24, %s2982_s24   ;;  %s2470_s23 = sphi %s2534_s23, %s2981_s23   ;;  %s2466_s22 = sphi %s2532_s22, %s2980_s22   ;;  %s2462_s21 = sphi %s2530_s21, %s2979_s21  }
   0x4   : > { %s2555_s27 = sadd.s32 1, %s2474_s24   ;;  %s157_s28 = sadd.s32 1, %s2470_s23 }
   0x5   : > { %s154_s29 = ssub.s32 %s2474_s24, %s2555_s27  ;;  %p167_p0 = scmp.ne.s32.totalorder %s2470_s23, %s2466_s22 }
   0x6   : > { %p155_p1 = scmp.eq.s32.totalorder %s154_s29, 0  ;;  %p168_p2 = scmp.eq.s32.totalorder %s2551_s25, 1 }
   0x7   : > { %p173_p3 = scmp.ne.s32.totalorder %s2466_s22, %s2462_s21  ;;  %p174_p4 = scmp.eq.s32.totalorder %s1980_s26, 1 }
   0x8   : > { %s2566_s30 = scalar_select %p155_p1, %s2470_s23, %s157_s28  }
   0x9   : > { %p2568_p5 = por %p168_p2, %p167_p0  ;;  %p2572_p6 = por %p174_p4, %p173_p3 }
   0xa   : > { %p1983_p7 = scmp.ge.s32.totalorder %s2474_s24, 1  ;;  %p216_p8 = scmp.lt.s32.totalorder %s2474_s24, 3 }
   0xc   : > { %p217_p9 = pnand %p1983_p7, %p216_p8 }
   0xd   : > { %v2324_v0 = vld [vmem:[%s2971_s1] sm:$0xff] (!%p217_p9)   ;;  %v2476_v1 = vmov (!%p217_p9), 0.0   ;;  %v2325_v2 = vld [vmem:[%s2971_s1 + $0x8] sm:$0xff] (!%p217_p9)   ;;  %vm2477_vm0 = vmmov (!%p217_p9), 0   ;;  %s1985_s13 = sshll.u32 (!%p217_p9), %s2551_s25, 1  ;;  %vm274_vm1 = vcmask (!%p217_p9), 261120  }
   0xe   : > { %220 = sbr.rel (%p217_p9) target bundleno = 4169 (0x1049), region = 44  ;;  %2140 = vmatprep.subr.bf16.mxu0 (!%p217_p9), %v2476_v1  ;;  %2148 = vmatprep.subr.bf16.mxu1 (!%p217_p9), %v2476_v1  ;;  %p247_p10 = scmp.lt.s32.totalorder (!%p217_p9), %s1985_s13, 3  ;;  %v261_v6 = vld [vmem:[%s2975_s5] ss:$0 sm:$0xff] (!%p217_p9)  ;;  %vm324_vm2 = vcmask (!%p217_p9), 64512   ;;  %vm451_vm3 = vcmask (!%p217_p9), 1043456  }
   0xf   : > { %2141 = vmatpush3.bf16.msra.mxu0 (!%p217_p9), %v2324_v0  ;;  %2144 = vmatprep.mubr.msk.bf16.mxu0 (!%p217_p9), %vm2477_vm0, %v2476_v1  ;;  %s2478_s20 = smov (!%p217_p9), 96   ;;  %s2479_s26 = smov (!%p217_p9), 64   ;;  %vm1235_vm4 = vcmask (!%p217_p9), 130048   ;;  %vm1238_vm5 = vcmask (!%p217_p9), 195584   ;;  %vm1901_vm6 = vcmask (!%p217_p9), 253952  }
  0x10   : > { %2142 = vmatprep.subr.bf16.mxu0 (!%p217_p9), %v2476_v1  ;;  %2150 = vmatprep.mubr.msk.bf16.mxu1 (!%p217_p9), %vm2477_vm0, %v2476_v1  ;;  %s2480_s28 = smov (!%p217_p9), 88   ;;  %s2481_s29 = smov (!%p217_p9), 120  }
  0x11   : > { %s2482_s9 = smov (!%p217_p9), 56   ;;  %s2483_s10 = smov (!%p217_p9), 80  }
  0x12   : > { %s2484_s11 = smov (!%p217_p9), 112   ;;  %s2485_s12 = smov (!%p217_p9), 48  }
  0x13   : > { %2143 = vmatpush3.bf16.msra.mxu0 (!%p217_p9), %v2325_v2  ;;  %s2488_s15 = smov (!%p217_p9), 40   ;;  %s2489_s16 = smov (!%p217_p9), 8  }
  0x14   : > { %2154 = vmatprep.subr.bf16.mxu0 (!%p217_p9), %v2476_v1  ;;  %s243_s19 = sand.u32 (!%p217_p9), 1, %s2466_s22  }
  0x15   : > { %s2984_s13 = smov (!%p247_p10, %s1985_s13), 3 }
  0x16   : > { %s1986_s14 = sshll.u32 %s2984_s13, 3  ;;  %s2486_s13 = smov 72  }
  0x17   : > { %s250_s17 = scalar_lea.vmem %s2970_s0, %s1986_s14  ;;  %s2487_s14 = smov 104  }
  0x18   : > { %v2596_v3 = vld [vmem:[%s250_s17] sm:$0xff]  ;;  %v2598_v4 = vld [vmem:[%s250_s17 + $0x8] sm:$0xff]  ;;  %s2490_s17 = smov 16  }
  0x19   : > { %v260_v5 = vpack.c.bf16 %v2598_v4, %v2596_v3 }
  0x1b   : > { %2145 = vmatmul.mubr.msk.bf16.vlgmr.msra.gmra.mrb[0].mxu0 %vm274_vm1, %v260_v5 }
  0x1c   : > { %2156 = vmatprep.mubr.msk.bf16.mxu0 %vm2477_vm0, %v2476_v1 }
  0xee   : > { %v312_v7 = vpop.f32.mrb[0].mxu0 }
  0xef   : > { %v313_v8 = vadd.f32 %v312_v7, %v261_v6  ;;  %v2146_v9 = vpop.f32.mrb[1].mxu0 }
  0xf0   : > { %v315_v10 = vpop.f32.mrb[2].mxu0 }
  0xf1   : > { %v2608_v11 = vpack.c.bf16 %v313_v8, %v313_v8  ;;  %v316_v12 = vadd.f32 %v315_v10, %v261_v6  ;;  %v2147_v13 = vpop.f32.mrb[3].mxu0 }
  0xf3   : > { %322 = vrot.lane.b32.xlu0 %v2608_v11, %s2478_s20  ;;  %v2611_v14 = vpack.c.bf16 %v316_v12, %v316_v12 }
  0xf7   : > { %372 = vrot.lane.b32.xlu0 %v2611_v14, %s2478_s20  ;;  %s1984_s20 = sshll.u32 %s243_s19, 1 }
 0x165   : > { %v323_v15 = vpop.permute.xlu0 %322 }
 0x166   : > { %v329_v16 = vsel %vm324_vm2, %v323_v15, 0 }
 0x167   : > { %2149 = vmatpush3.bf16.xpose.msra.mxu1 %v329_v16 }
 0x168   : > { %2160 = vmatprep.subr.bf16.mxu1 %v2476_v1 }
 0x169   : > { %v373_v17 = vpop.permute.xlu0 %372 }
 0x16a   : > { %v378_v18 = vsel %vm324_vm2, %v373_v17, 0 }
 0x16b   : > { %2155 = vmatpush3.bf16.xpose.msra.mxu0 %v378_v18 }
 0x16c   : > { %2166 = vmatprep.subr.bf16.mxu0 %v2476_v1 }
 0x16e   : > { %2151 = vmatmul.mubr.msk.bf16.vlgmr.msra.gmra.mrb[0].mxu1 %vm324_vm2, %v2608_v11 }
 0x16f   : > { %2162 = vmatprep.mubr.msk.bf16.mxu1 %vm2477_vm0, %v2476_v1 }
 0x172   : > { %2157 = vmatmul.mubr.msk.bf16.vlgmr.msra.gmra.mrb[4].mxu0 %vm324_vm2, %v2611_v14 }
 0x173   : > { %2168 = vmatprep.mubr.msk.bf16.mxu0 %vm2477_vm0, %v2476_v1 }
 0x241   : > { %v365_v19 = vpop.f32.mrb[0].mxu1 }
 0x242   : > { %v420_v20 = vmul.f32 0.35355338, %v365_v19  ;;  %v2152_v21 = vpop.f32.mrb[1].mxu1 }
 0x243   : > { %v368_v22 = vpop.f32.mrb[2].mxu1 }
 0x244   : > { %v2153_v23 = vpop.f32.mrb[3].mxu1  ;;  %v422_v24 = vsel %vm324_vm2, %v420_v20, -inf }
 0x245   : > { %423 = vmax.xlane.f32.xlu1 %v422_v24  ;;  %v414_v25 = vpop.f32.mrb[4].mxu0 }
 0x246   : > { %v421_v26 = vmul.f32 0.35355338, %v414_v25  ;;  %v2158_v27 = vpop.f32.mrb[5].mxu0 }
 0x247   : > { %v417_v28 = vpop.f32.mrb[6].mxu0 }
 0x248   : > { %v2159_v29 = vpop.f32.mrb[7].mxu0  ;;  %v425_v30 = vsel %vm324_vm2, %v421_v26, -inf }
 0x249   : > { %426 = vmax.xlane.f32.xlu1 %v425_v30 }
 0x25a   : > { %446 = vrot.lane.b32.xlu1 %v2608_v11, %s2479_s26 }
 0x25e   : > { %495 = vrot.lane.b32.xlu1 %v2611_v14, %s2479_s26  ;;  %s2057_s26 = sshll.u32 %s2551_s25, 5 }
 0x262   : > { %545 = vrot.lane.b32.xlu1 %v2608_v11, %s2480_s28 }
 0x2d2   : > { %v424_v31 = vpop.xlane.xlu1 %423 }
 0x2d3   : > { %v428_v32 = vsub.f32 %v420_v20, %v424_v31 }
 0x2d5   : > { %v430_v33 = vmul.f32 1.442695, %v428_v32 }
 0x2d6   : > { %v427_v34 = vpop.xlane.xlu1 %426 }
 0x2d7   : > { %2372 = vpow2.f32 %v430_v33  ;;  %v429_v35 = vsub.f32 %v421_v26, %v427_v34 }
 0x2d9   : > { %v432_v36 = vmul.f32 1.442695, %v429_v35 }
 0x2da   : > { %v447_v37 = vpop.permute.xlu1 %446 }
 0x2db   : > { %2374 = vpow2.f32 %v432_v36  ;;  %v453_v38 = vsel %vm451_vm3, %v447_v37, 0 }
 0x2dc   : > { %2161 = vmatpush3.bf16.msra.mxu1 %v453_v38 }
 0x2dd   : > { %2172 = vmatprep.subr.bf16.mxu1 %v2476_v1 }
 0x2de   : > { %v496_v39 = vpop.permute.xlu1 %495 }
 0x2df   : > { %v501_v40 = vsel %vm451_vm3, %v496_v39, 0 }
 0x2e0   : > { %2167 = vmatpush3.bf16.msra.mxu0 %v501_v40 }
 0x2e1   : > { %v2373_v41 = vpop.eup %2372  ;;  %2178 = vmatprep.subr.bf16.mxu0 %v2476_v1 }
 0x2e2   : > { %v434_v42 = vsel %vm324_vm2, %v2373_v41, 0.0  ;;  %v546_v45 = vpop.permute.xlu1 %545 }
 0x2e3   : > { %435 = vadd.xlane.f32.xlu0 %v434_v42  ;;  %v551_v52 = vsel %vm324_vm2, %v546_v45, 0 }
 0x2e5   : > { %v2375_v43 = vpop.eup %2374 }
 0x2e6   : > { %v437_v44 = vsel %vm324_vm2, %v2375_v43, 0.0 }
 0x2e7   : > { %438 = vadd.xlane.f32.xlu1 %v437_v44 }
 0x2f8   : > { %595 = vrot.lane.b32.xlu1 %v2611_v14, %s2480_s28  ;;  %s2491_s28 = smov 24  }
 0x2f9   : > { %543 = vrot.lane.b32.xlu0 %v2608_v11, %s2481_s29 }
 0x2fc   : > { %593 = vrot.lane.b32.xlu1 %v2611_v14, %s2481_s29 }
 0x370   : > { %v436_v46 = vpop.xlane.xlu0 %435 }
 0x371   : > { %2376 = vrcp.f32 %v436_v46 }
 0x374   : > { %v439_v47 = vpop.xlane.xlu1 %438  ;;  %v544_v57 = vpop.permute.xlu0 %543 }
 0x375   : > { %2378 = vrcp.f32 %v439_v47 }
 0x378   : > { %v596_v54 = vpop.permute.xlu1 %595 }
 0x379   : > { %v601_v56 = vsel %vm324_vm2, %v596_v54, 0 }
 0x37b   : > { %v2377_v48 = vpop.eup %2376 }
 0x37c   : > { %v442_v49 = vmul.f32 %v2377_v48, %v2373_v41  ;;  %v594_v58 = vpop.permute.xlu1 %593 }
 0x37e   : > { %v444_v50 = vpack.c.bf16 %v442_v49, %v442_v49 }
 0x37f   : > { %v2379_v51 = vpop.eup %2378 }
 0x380   : > { %v443_v53 = vmul.f32 %v2379_v51, %v2375_v43  ;;  %2163 = vmatmul.mubr.msk.bf16.vlgmr.msra.gmra.mrb[4].mxu1 %vm324_vm2, %v444_v50 }
 0x381   : > { %2173 = vmatpush3.bf16.xpose.msra.mxu1 %v551_v52  ;;  %2174 = vmatprep.mubr.msk.bf16.mxu1 %vm2477_vm0, %v2476_v1 }
 0x382   : > { %v445_v55 = vpack.c.bf16 %v443_v53, %v443_v53  ;;  %2184 = vmatprep.subr.bf16.mxu1 %v2476_v1 }
 0x384   : > { %2169 = vmatmul.mubr.msk.bf16.vlgmr.msra.gmra.mrb[8].mxu0 %vm324_vm2, %v445_v55 }
 0x385   : > { %2179 = vmatpush3.bf16.xpose.msra.mxu0 %v601_v56  ;;  %2180 = vmatprep.mubr.msk.bf16.mxu0 %vm2477_vm0, %v2476_v1 }
 0x386   : > { %2190 = vmatprep.subr.bf16.mxu0 %v2476_v1 }
 0x388   : > { %2175 = vmatmul.mubr.msk.bf16.vlgmr.msra.gmra.mrb[8].mxu1 %vm324_vm2, %v544_v57 }
 0x389   : > { %2186 = vmatprep.mubr.msk.bf16.mxu1 %vm2477_vm0, %v2476_v1 }
 0x38c   : > { %2181 = vmatmul.mubr.msk.bf16.vlgmr.msra.gmra.mrb[12].mxu0 %vm324_vm2, %v594_v58 }
 0x38d   : > { %2192 = vmatprep.mubr.msk.bf16.mxu0 %vm2477_vm0, %v2476_v1 }
 0x453   : > { %v2656_v59 = vpop.f32.mrb[4].mxu1 }
 0x454   : > { %v2164_v60 = vpop.f32.mrb[5].mxu1 }
 0x455   : > { %v492_v61 = vpop.f32.mrb[6].mxu1 }
 0x456   : > { %v2165_v62 = vpop.f32.mrb[7].mxu1 }
 0x457   : > { %v2658_v63 = vpop.f32.mrb[8].mxu0 }
 0x458   : > { %v2170_v0 = vpop.f32.mrb[9].mxu0 }
 0x459   : > { %v540_v2 = vpop.f32.mrb[10].mxu0 }
 0x45a   : > { %v2171_v5 = vpop.f32.mrb[11].mxu0 }
 0x45b   : > { %v587_v6 = vpop.f32.mrb[8].mxu1 }
 0x45c   : > { %v643_v7 = vmul.f32 0.35355338, %v587_v6  ;;  %v2176_v8 = vpop.f32.mrb[9].mxu1 }
 0x45d   : > { %v590_v9 = vpop.f32.mrb[10].mxu1 }
 0x45e   : > { %v2177_v10 = vpop.f32.mrb[11].mxu1  ;;  %v645_v12 = vsel %vm324_vm2, %v643_v7, -inf }
 0x45f   : > { %646 = vmax.xlane.f32.xlu1 %v645_v12  ;;  %v637_v13 = vpop.f32.mrb[12].mxu0 }
 0x460   : > { %v644_v15 = vmul.f32 0.35355338, %v637_v13  ;;  %v2182_v16 = vpop.f32.mrb[13].mxu0 }
 0x461   : > { %v640_v17 = vpop.f32.mrb[14].mxu0 }
 0x462   : > { %v2183_v18 = vpop.f32.mrb[15].mxu0  ;;  %v648_v19 = vsel %vm324_vm2, %v644_v15, -inf }
 0x463   : > { %649 = vmax.xlane.f32.xlu0 %v648_v19 }
 0x470   : > { %669 = vrot.lane.b32.xlu1 %v2608_v11, %s2482_s9 }
 0x474   : > { %767 = vrot.lane.b32.xlu1 %v2608_v11, %s2483_s10 }
 0x479   : > { %717 = vrot.lane.b32.xlu0 %v2611_v14, %s2482_s9 }
 0x47d   : > { %765 = vrot.lane.b32.xlu0 %v2608_v11, %s2484_s11 }
 0x4ec   : > { %v647_v20 = vpop.xlane.xlu1 %646 }
 0x4ed   : > { %v651_v21 = vsub.f32 %v643_v7, %v647_v20 }
 0x4ef   : > { %v653_v22 = vmul.f32 1.442695, %v651_v21 }
 0x4f0   : > { %v670_v23 = vpop.permute.xlu1 %669  ;;  %v650_v24 = vpop.xlane.xlu0 %649 }
 0x4f1   : > { %2380 = vpow2.f32 %v653_v22  ;;  %v675_v25 = vsel %vm451_vm3, %v670_v23, 0  ;;  %v652_v26 = vsub.f32 %v644_v15, %v650_v24 }
 0x4f2   : > { %2185 = vmatpush3.bf16.msra.mxu1 %v675_v25 }
 0x4f3   : > { %v655_v27 = vmul.f32 1.442695, %v652_v26  ;;  %2196 = vmatprep.subr.bf16.mxu1 %v2476_v1 }
 0x4f4   : > { %v718_v28 = vpop.permute.xlu0 %717  ;;  %v768_v34 = vpop.permute.xlu1 %767 }
 0x4f5   : > { %2382 = vpow2.f32 %v655_v27  ;;  %v723_v29 = vsel %vm451_vm3, %v718_v28, 0  ;;  %v773_v41 = vsel %vm324_vm2, %v768_v34, 0 }
 0x4f6   : > { %2191 = vmatpush3.bf16.msra.mxu0 %v723_v29 }
 0x4f7   : > { %2202 = vmatprep.subr.bf16.mxu0 %v2476_v1 }
 0x4f8   : > { %v766_v46 = vpop.permute.xlu0 %765 }
 0x4fb   : > { %v2381_v30 = vpop.eup %2380 }
 0x4fc   : > { %v657_v31 = vsel %vm324_vm2, %v2381_v30, 0.0 }
 0x4fd   : > { %658 = vadd.xlane.f32.xlu1 %v657_v31 }
 0x4ff   : > { %v2383_v32 = vpop.eup %2382 }
 0x500   : > { %v660_v33 = vsel %vm324_vm2, %v2383_v32, 0.0 }
 0x501   : > { %661 = vadd.xlane.f32.xlu1 %v660_v33 }
 0x512   : > { %817 = vrot.lane.b32.xlu1 %v2611_v14, %s2483_s10 }
 0x516   : > { %815 = vrot.lane.b32.xlu1 %v2611_v14, %s2484_s11  ;;  %s2923_s11 = scalar_lea.hbm %s2976_s6, %s2057_s26 }
 0x58a   : > { %v659_v35 = vpop.xlane.xlu1 %658 }
 0x58b   : > { %2384 = vrcp.f32 %v659_v35 }
 0x58e   : > { %v662_v36 = vpop.xlane.xlu1 %661 }
 0x58f   : > { %2386 = vrcp.f32 %v662_v36 }
 0x592   : > { %v818_v43 = vpop.permute.xlu1 %817 }
 0x593   : > { %v823_v45 = vsel %vm324_vm2, %v818_v43, 0 }
 0x595   : > { %v2385_v37 = vpop.eup %2384 }
 0x596   : > { %v665_v38 = vmul.f32 %v2385_v37, %v2381_v30  ;;  %v816_v47 = vpop.permute.xlu1 %815 }
 0x598   : > { %v667_v39 = vpack.c.bf16 %v665_v38, %v665_v38 }
 0x599   : > { %v2387_v40 = vpop.eup %2386 }
 0x59a   : > { %v666_v42 = vmul.f32 %v2387_v40, %v2383_v32  ;;  %2187 = vmatmul.mubr.msk.bf16.vlgmr.msra.gmra.mrb[12].mxu1 %vm324_vm2, %v667_v39 }
 0x59b   : > { %2197 = vmatpush3.bf16.xpose.msra.mxu1 %v773_v41  ;;  %2198 = vmatprep.mubr.msk.bf16.mxu1 %vm2477_vm0, %v2476_v1 }
 0x59c   : > { %v668_v44 = vpack.c.bf16 %v666_v42, %v666_v42  ;;  %2208 = vmatprep.subr.bf16.mxu1 %v2476_v1 }
 0x59e   : > { %2193 = vmatmul.mubr.msk.bf16.vlgmr.msra.gmra.mrb[16].mxu0 %vm324_vm2, %v668_v44 }
 0x59f   : > { %2203 = vmatpush3.bf16.xpose.msra.mxu0 %v823_v45  ;;  %2204 = vmatprep.mubr.msk.bf16.mxu0 %vm2477_vm0, %v2476_v1 }
 0x5a0   : > { %2214 = vmatprep.subr.bf16.mxu0 %v2476_v1 }
 0x5a2   : > { %2199 = vmatmul.mubr.msk.bf16.vlgmr.msra.gmra.mrb[16].mxu1 %vm324_vm2, %v766_v46 }
 0x5a3   : > { %2210 = vmatprep.mubr.msk.bf16.mxu1 %vm2477_vm0, %v2476_v1 }
 0x5a6   : > { %2205 = vmatmul.mubr.msk.bf16.vlgmr.msra.gmra.mrb[20].mxu0 %vm324_vm2, %v816_v47 }
 0x5a7   : > { %2216 = vmatprep.mubr.msk.bf16.mxu0 %vm2477_vm0, %v2476_v1 }
 0x66d   : > { %v2690_v48 = vpop.f32.mrb[12].mxu1 }
 0x66e   : > { %v2188_v49 = vpop.f32.mrb[13].mxu1 }
 0x66f   : > { %v714_v50 = vpop.f32.mrb[14].mxu1 }
 0x670   : > { %v2189_v51 = vpop.f32.mrb[15].mxu1 }
 0x671   : > { %v2692_v52 = vpop.f32.mrb[16].mxu0 }
 0x672   : > { %v2309_v53 = vpack.i.bf16 %v2692_v52, %v2690_v48  ;;  %v2194_v54 = vpop.f32.mrb[17].mxu0 }
 0x673   : > { %v762_v55 = vpop.f32.mrb[18].mxu0 }
 0x674   : > { %v2195_v56 = vpop.f32.mrb[19].mxu0 }
 0x675   : > { %v809_v57 = vpop.f32.mrb[16].mxu1 }
 0x676   : > { %v865_v58 = vmul.f32 0.35355338, %v809_v57  ;;  %v2200_v60 = vpop.f32.mrb[17].mxu1 }
 0x677   : > { %v812_v61 = vpop.f32.mrb[18].mxu1 }
 0x678   : > { %v2201_v62 = vpop.f32.mrb[19].mxu1  ;;  %v867_v0 = vsel %vm324_vm2, %v865_v58, -inf }
 0x679   : > { %868 = vmax.xlane.f32.xlu0 %v867_v0  ;;  %v859_v2 = vpop.f32.mrb[20].mxu0 }
 0x67a   : > { %v866_v5 = vmul.f32 0.35355338, %v859_v2  ;;  %v2206_v6 = vpop.f32.mrb[21].mxu0 }
 0x67b   : > { %v862_v7 = vpop.f32.mrb[22].mxu0 }
 0x67c   : > { %v2207_v8 = vpop.f32.mrb[23].mxu0  ;;  %v870_v9 = vsel %vm324_vm2, %v866_v5, -inf }
 0x67d   : > { %871 = vmax.xlane.f32.xlu1 %v870_v9 }
 0x68e   : > { %891 = vrot.lane.b32.xlu1 %v2608_v11, %s2485_s12 }
 0x692   : > { %989 = vrot.lane.b32.xlu1 %v2608_v11, %s2486_s13 }
 0x696   : > { %1039 = vrot.lane.b32.xlu1 %v2611_v14, %s2486_s13  ;;  %s2493_s13 = smov [#allocation2]  }
 0x69a   : > { %1037 = vrot.lane.b32.xlu1 %v2611_v14, %s2487_s14 }
 0x706   : > { %v869_v10 = vpop.xlane.xlu0 %868 }
 0x707   : > { %v873_v12 = vsub.f32 %v865_v58, %v869_v10 }
 0x709   : > { %v875_v13 = vmul.f32 1.442695, %v873_v12 }
 0x70a   : > { %v872_v15 = vpop.xlane.xlu1 %871 }
 0x70b   : > { %2388 = vpow2.f32 %v875_v13  ;;  %v874_v16 = vsub.f32 %v866_v5, %v872_v15 }
 0x70d   : > { %v877_v17 = vmul.f32 1.442695, %v874_v16 }
 0x70e   : > { %v892_v18 = vpop.permute.xlu1 %891 }
 0x70f   : > { %2390 = vpow2.f32 %v877_v17  ;;  %v897_v19 = vsel %vm451_vm3, %v892_v18, 0 }
 0x710   : > { %2209 = vmatpush3.bf16.msra.mxu1 %v897_v19 }
 0x711   : > { %2220 = vmatprep.subr.bf16.mxu1 %v2476_v1 }
 0x712   : > { %v990_v29 = vpop.permute.xlu1 %989 }
 0x713   : > { %v995_v33 = vsel %vm324_vm2, %v990_v29, 0 }
 0x715   : > { %v2389_v20 = vpop.eup %2388 }
 0x716   : > { %v879_v21 = vsel %vm324_vm2, %v2389_v20, 0.0  ;;  %v1040_v35 = vpop.permute.xlu1 %1039 }
 0x717   : > { %880 = vadd.xlane.f32.xlu0 %v879_v21  ;;  %v1045_v37 = vsel %vm324_vm2, %v1040_v35, 0 }
 0x719   : > { %v2391_v22 = vpop.eup %2390 }
 0x71a   : > { %v882_v23 = vsel %vm324_vm2, %v2391_v22, 0.0  ;;  %v1038_v39 = vpop.permute.xlu1 %1037 }
 0x71b   : > { %883 = vadd.xlane.f32.xlu0 %v882_v23 }
 0x731   : > { %939 = vrot.lane.b32.xlu0 %v2611_v14, %s2485_s12  ;;  %s2927_s12 = scalar_lea.sflag [#allocation3], %s243_s19 }
 0x735   : > { %987 = vrot.lane.b32.xlu0 %v2608_v11, %s2487_s14  ;;  %s2416_s14 = sshll.u32 %s2493_s13, 4  ;;  %s2417_s14 = int_to_ptr.vmem [resolvable:$false] %s2416_s14 }
 0x7a4   : > { %v881_v24 = vpop.xlane.xlu0 %880 }
 0x7a5   : > { %2392 = vrcp.f32 %v881_v24 }
 0x7a8   : > { %v884_v25 = vpop.xlane.xlu0 %883 }
 0x7a9   : > { %2394 = vrcp.f32 %v884_v25  ;;  %v2327_v25 = vld [vmem:[%s2972_s2 + $0x8] sm:$0xff]  }
 0x7ac   : > { %v940_v26 = vpop.permute.xlu0 %939 }
 0x7ad   : > { %v945_v27 = vsel %vm451_vm3, %v940_v26, 0 }
 0x7ae   : > { %2215 = vmatpush3.bf16.msra.mxu0 %v945_v27 }
 0x7af   : > { %v2393_v28 = vpop.eup %2392  ;;  %2226 = vmatprep.subr.bf16.mxu0 %v2476_v1 }
 0x7b0   : > { %v887_v30 = vmul.f32 %v2393_v28, %v2389_v20  ;;  %v988_v38 = vpop.permute.xlu0 %987 }
 0x7b2   : > { %v889_v31 = vpack.c.bf16 %v887_v30, %v887_v30 }
 0x7b3   : > { %v2395_v32 = vpop.eup %2394 }
 0x7b4   : > { %v888_v34 = vmul.f32 %v2395_v32, %v2391_v22  ;;  %2211 = vmatmul.mubr.msk.bf16.vlgmr.msra.gmra.mrb[20].mxu1 %vm324_vm2, %v889_v31 }
 0x7b5   : > { %2221 = vmatpush3.bf16.xpose.msra.mxu1 %v995_v33  ;;  %2222 = vmatprep.mubr.msk.bf16.mxu1 %vm2477_vm0, %v2476_v1 }
 0x7b6   : > { %v890_v36 = vpack.c.bf16 %v888_v34, %v888_v34  ;;  %2232 = vmatprep.subr.bf16.mxu1 %v2476_v1 }
 0x7b8   : > { %2217 = vmatmul.mubr.msk.bf16.vlgmr.msra.gmra.mrb[24].mxu0 %vm324_vm2, %v890_v36 }
 0x7b9   : > { %2227 = vmatpush3.bf16.xpose.msra.mxu0 %v1045_v37  ;;  %2228 = vmatprep.mubr.msk.bf16.mxu0 %vm2477_vm0, %v2476_v1 }
 0x7ba   : > { %2238 = vmatprep.subr.bf16.mxu0 %v2476_v1 }
 0x7bc   : > { %2223 = vmatmul.mubr.msk.bf16.vlgmr.msra.gmra.mrb[24].mxu1 %vm324_vm2, %v988_v38 }
 0x7bd   : > { %2234 = vmatprep.mubr.msk.bf16.mxu1 %vm2477_vm0, %v2476_v1 }
 0x7c0   : > { %2229 = vmatmul.mubr.msk.bf16.vlgmr.msra.gmra.mrb[28].mxu0 %vm324_vm2, %v1038_v39 }
 0x7c1   : > { %2240 = vmatprep.mubr.msk.bf16.mxu0 %vm2477_vm0, %v2476_v1 }
 0x887   : > { %v933_v40 = vpop.f32.mrb[20].mxu1 }
 0x888   : > { %v2212_v41 = vpop.f32.mrb[21].mxu1 }
 0x889   : > { %v936_v42 = vpop.f32.mrb[22].mxu1 }
 0x88a   : > { %v2213_v43 = vpop.f32.mrb[23].mxu1 }
 0x88b   : > { %v981_v44 = vpop.f32.mrb[24].mxu0 }
 0x88c   : > { %v2314_v45 = vpack.i.bf16 %v981_v44, %v933_v40  ;;  %v2218_v46 = vpop.f32.mrb[25].mxu0 }
 0x88d   : > { %v984_v47 = vpop.f32.mrb[26].mxu0 }
 0x88e   : > { %v2219_v49 = vpop.f32.mrb[27].mxu0 }
 0x88f   : > { %v1031_v50 = vpop.f32.mrb[24].mxu1 }
 0x890   : > { %v1087_v51 = vmul.f32 0.35355338, %v1031_v50  ;;  %v2224_v54 = vpop.f32.mrb[25].mxu1 }
 0x891   : > { %v1034_v55 = vpop.f32.mrb[26].mxu1 }
 0x892   : > { %v2225_v56 = vpop.f32.mrb[27].mxu1  ;;  %v1089_v57 = vsel %vm324_vm2, %v1087_v51, -inf }
 0x893   : > { %1090 = vmax.xlane.f32.xlu0 %v1089_v57  ;;  %v1081_v58 = vpop.f32.mrb[28].mxu0 }
 0x894   : > { %v1088_v60 = vmul.f32 0.35355338, %v1081_v58  ;;  %v2230_v61 = vpop.f32.mrb[29].mxu0 }
 0x895   : > { %v1084_v62 = vpop.f32.mrb[30].mxu0 }
 0x896   : > { %v2231_v0 = vpop.f32.mrb[31].mxu0  ;;  %v1092_v2 = vsel %vm324_vm2, %v1088_v60, -inf }
 0x897   : > { %1093 = vmax.xlane.f32.xlu1 %v1092_v2 }
 0x8a8   : > { %1113 = vrot.lane.b32.xlu1 %v2608_v11, %s2488_s15 }
 0x8ac   : > { %2310 = vrot.lane.b32.xlu1 %v2309_v53, %s2489_s16 }
 0x8b0   : > { %2315 = vrot.lane.b32.xlu1 %v2314_v45, %s2490_s17 }
 0x920   : > { %v1091_v5 = vpop.xlane.xlu0 %1090 }
 0x921   : > { %v1095_v6 = vsub.f32 %v1087_v51, %v1091_v5  ;;  %v1246_v51 = vld [vmem:[%s2975_s5 + $0x1] ss:$0 sm:$0xff] }
 0x923   : > { %v1097_v7 = vmul.f32 1.442695, %v1095_v6 }
 0x924   : > { %v1094_v8 = vpop.xlane.xlu1 %1093 }
 0x925   : > { %2396 = vpow2.f32 %v1097_v7  ;;  %v1096_v9 = vsub.f32 %v1088_v60, %v1094_v8 }
 0x927   : > { %v1099_v10 = vmul.f32 1.442695, %v1096_v9 }
 0x928   : > { %v1114_v12 = vpop.permute.xlu1 %1113 }
 0x929   : > { %2398 = vpow2.f32 %v1099_v10  ;;  %v1119_v13 = vsel %vm451_vm3, %v1114_v12, 0 }
 0x92a   : > { %2233 = vmatpush3.bf16.msra.mxu1 %v1119_v13  ;;  %v2333_v13 = vld [vmem:[%s2973_s3 + $0xc] ss:$16 sps:$4 sm:$0xff]  }
 0x92b   : > { %2244 = vmatprep.subr.bf16.mxu1 %v2476_v1 }
 0x92c   : > { %v2311_v35 = vpop.permute.xlu1 %2310 }
 0x92d   : > { %v2313_v37 = vunpack.i.h.bf16 %v2311_v35 }
 0x92f   : > { %v2397_v11 = vpop.eup %2396  ;;  %v1234_v41 = vsel %vm324_vm2, %v2658_v63, %v2313_v37 }
 0x930   : > { %v1101_v48 = vsel %vm324_vm2, %v2397_v11, 0.0  ;;  %v2316_v36 = vpop.permute.xlu1 %2315 }
 0x931   : > { %1102 = vadd.xlane.f32.xlu0 %v1101_v48  ;;  %v2318_v38 = vunpack.i.h.bf16 %v2316_v36  ;;  %v2317_v39 = vunpack.i.l.bf16 %v2316_v36  ;;  %v2331_v48 = vld [vmem:[%s2973_s3 + $0x8] ss:$16 sps:$4 sm:$0xff]   ;;  %v2343_v36 = vld [vmem:[%s2974_s4 + $0x80] sm:$0xff]  }
 0x933   : > { %v2399_v52 = vpop.eup %2398  ;;  %v1237_v46 = vsel %vm1235_vm4, %v1234_v41, %v2318_v38  ;;  %v2345_v38 = vld [vmem:[%s2974_s4 + $0xc8] sm:$0xff]   ;;  %v2348_v41 = vld [vmem:[%s2974_s4 + $0x50] sm:$0xff]  }
 0x934   : > { %v1104_v53 = vsel %vm324_vm2, %v2399_v52, 0.0 }
 0x935   : > { %1105 = vadd.xlane.f32.xlu0 %v1104_v53  ;;  %v2336_v53 = vld [vmem:[%s2973_s3 + $0x24] ss:$16 sps:$4 sm:$0xff]  }
 0x94b   : > { %1161 = vrot.lane.b32.xlu0 %v2611_v14, %s2488_s15  ;;  %v2326_v14 = vld [vmem:[%s2972_s2] sm:$0xff]   ;;  %s2418_s15 = scalar_lea.vmem %s2417_s14, 64 }
 0x9be   : > { %v1103_v15 = vpop.xlane.xlu0 %1102 }
 0x9bf   : > { %2400 = vrcp.f32 %v1103_v15  ;;  %v2337_v15 = vld [vmem:[%s2973_s3 + $0x28] ss:$16 sps:$4 sm:$0xff]  }
 0x9c2   : > { %v1106_v16 = vpop.xlane.xlu0 %1105 }
 0x9c3   : > { %2402 = vrcp.f32 %v1106_v16  ;;  %v2339_v16 = vld [vmem:[%s2973_s3 + $0x2c] ss:$16 sps:$4 sm:$0xff]  }
 0x9c6   : > { %v1162_v17 = vpop.permute.xlu0 %1161 }
 0x9c7   : > { %v1167_v18 = vsel %vm451_vm3, %v1162_v17, 0  ;;  %v2492_v17 = vmov 0  }
 0x9c8   : > { %2239 = vmatpush3.bf16.msra.mxu0 %v1167_v18  ;;  %v2340_v18 = vld [vmem:[%s2974_s4 + $0x40] sm:$0xff]  }
 0x9c9   : > { %v2401_v19 = vpop.eup %2400 }
 0x9ca   : > { %v1109_v20 = vmul.f32 %v2401_v19, %v2397_v11  ;;  %v2328_v11 = vld [vmem:[%s2973_s3] ss:$16 sps:$4 sm:$0xff]  }
 0x9cb   : > { %v2341_v19 = vld [vmem:[%s2974_s4 + $0xc0] sm:$0xff]  }
 0x9cc   : > { %v1111_v21 = vpack.c.bf16 %v1109_v20, %v1109_v20 }
 0x9cd   : > { %v2403_v22 = vpop.eup %2402 }
 0x9ce   : > { %v1110_v23 = vmul.f32 %v2403_v22, %v2399_v52  ;;  %2235 = vmatmul.mubr.msk.bf16.vlgmr.msra.gmra.mrb[28].mxu1 %vm324_vm2, %v1111_v21  ;;  %v2334_v52 = vld [vmem:[%s2973_s3 + $0x20] ss:$16 sps:$4 sm:$0xff]  }
 0x9cf   : > { %2248 = vmatprep.mubr.msk.bf16.mxu1 %vm2477_vm0, %v2476_v1  ;;  %2245 = vmatpush3.bf16.msra.mxu1 %v2326_v14 }
 0x9d0   : > { %v1112_v24 = vpack.c.bf16 %v1110_v23, %v1110_v23  ;;  %2246 = vmatprep.subr.bf16.mxu1 %v2476_v1  ;;  %v2312_v1 = vunpack.i.l.bf16 %v2311_v35  ;;  %v2342_v35 = vld [vmem:[%s2974_s4] sm:$0xff]  }
 0x9d2   : > { %2241 = vmatmul.mubr.msk.bf16.vlgmr.msra.gmra.mrb[32].mxu0 %vm324_vm2, %v1112_v24  ;;  %v1233_v42 = vsel %vm324_vm2, %v2656_v59, %v2312_v1  ;;  %v2344_v1 = vld [vmem:[%s2974_s4 + $0x48] sm:$0xff]  }
 0x9d3   : > { %2247 = vmatpush3.bf16.msra.mxu1 %v2327_v25  ;;  %v1236_v45 = vsel %vm1235_vm4, %v1233_v42, %v2317_v39  ;;  %1445 = vmatprep.mubr.bf16.mxu0 %v2492_v17  ;;  %v2346_v39 = vld [vmem:[%s2974_s4 + $0x8] sm:$0xff]   ;;  %v2349_v42 = vld [vmem:[%s2974_s4 + $0xd0] sm:$0xff]  }
 0x9d4   : > { %1456 = vmatprep.subr.bf16.mxu1 %v2333_v13 }
 0xaa1   : > { %v1155_v26 = vpop.f32.mrb[28].mxu1 }
 0xaa2   : > { %v2236_v27 = vpop.f32.mrb[29].mxu1 }
 0xaa3   : > { %v1158_v28 = vpop.f32.mrb[30].mxu1 }
 0xaa4   : > { %v2237_v29 = vpop.f32.mrb[31].mxu1 }
 0xaa5   : > { %v1203_v30 = vpop.f32.mrb[32].mxu0 }
 0xaa6   : > { %v2319_v31 = vpack.i.bf16 %v1203_v30, %v1155_v26  ;;  %v2242_v32 = vpop.f32.mrb[33].mxu0  ;;  %v1305_v26 = vld [vmem:[%s2975_s5 + $0x2] ss:$0 sm:$0xff] }
 0xaa7   : > { %v1206_v33 = vpop.f32.mrb[34].mxu0 }
 0xaa8   : > { %2320 = vrot.lane.b32.xlu0 %v2319_v31, %s2491_s28  ;;  %v2243_v34 = vpop.f32.mrb[35].mxu0  ;;  %v1306_v31 = vld [vmem:[%s2975_s5 + $0x3] ss:$0 sm:$0xff]  ;;  %s245_s28 = scalar_lea.vmem [#allocation2], %s1984_s20 }
 0xaa9   : > { %s1918_s29 = sshll.u32 %s245_s28, 4  ;;  %s2925_s29 = int_to_ptr.vmem [resolvable:$true] %s1918_s29 }
 0xaaa   : > { %s2412_s25 = scalar_lea.vmem %s2925_s29, 32  ;;  %p2419_p0 = scmp.lt.s32.totalorder %s2925_s29, %s2417_s14 }
 0xaab   : > { %p2413_p11 = scmp.ne.s32.totalorder %s2925_s29, %s2412_s25  ;;  %p2420_p1 = scmp.lt.s32.totalorder %s2418_s15, %s2412_s25 }
 0xaad   : > { %p2414_p12 = pnand %p2413_p11, %p2568_p5  ;;  %p2421_p2 = por %p2420_p1, %p2419_p0 }
 0xaaf   : > { %p2415_p13 = pneg %p2414_p12 }
 0xab1   : > { %p2422_p3 = pnand %p2421_p2, %p2415_p13 }
 0xb1a   : > { %v2321_v40 = vpop.permute.xlu0 %2320 }
 0xb1b   : > { %v2323_v43 = vunpack.i.h.bf16 %v2321_v40  ;;  %v2322_v44 = vunpack.i.l.bf16 %v2321_v40  ;;  %v2347_v40 = vld [vmem:[%s2974_s4 + $0x88] sm:$0xff]  }
 0xb1d   : > { %v1240_v47 = vsel %vm1238_vm5, %v1237_v46, %v2323_v43  ;;  %v1239_v49 = vsel %vm1238_vm5, %v1236_v45, %v2322_v44  ;;  %v2350_v43 = vld [vmem:[%s2974_s4 + $0x10] sm:$0xff]   ;;  %v2352_v45 = vld [vmem:[%s2974_s4 + $0x58] sm:$0xff]  }
 0xb1e   : > { %v1245_v50 = vpack.c.bf16 %v1240_v47, %v1239_v49  ;;  %v2351_v44 = vld [vmem:[%s2974_s4 + $0x90] sm:$0xff]   ;;  %v2353_v46 = vld [vmem:[%s2974_s4 + $0xd8] sm:$0xff]  }
 0xb1f   : > { %v2354_v47 = vld [vmem:[%s2974_s4 + $0x18] sm:$0xff]  }
 0xb20   : > { %2249 = vmatmul.mubr.msk.bf16.vlgmr.msra.gmra.mrb[32].mxu1 %vm274_vm1, %v1245_v50  ;;  %v2355_v49 = vld [vmem:[%s2974_s4 + $0x98] sm:$0xff]   ;;  %v2356_v50 = vld [vmem:[%s2974_s4 + $0x60] sm:$0xff]  }
 0xb21   : > { %1457 = vmatpush1.bf16.msra.mxu1 %v2331_v48  ;;  %1488 = vmatprep.mubr.bf16.mxu1 %v2492_v17 }
 0xb22   : > { %1458 = vmatprep.subr.bf16.mxu1 %v2339_v16 }
 0xb25   : > { %1459 = vmatpush1.bf16.msra.mxu1 %v2337_v15 }
 0xb26   : > { %2118 = vmatprep.subr.bf16.mxu1 %v2341_v19 }
 0xbf3   : > { %v1296_v54 = vpop.f32.mrb[32].mxu1 }
 0xbf4   : > { %v1297_v55 = vadd.f32 %v1296_v54, %v1246_v51  ;;  %v2250_v56 = vpop.f32.mrb[33].mxu1  ;;  %v2358_v54 = vld [vmem:[%s2974_s4 + $0x20] sm:$0xff]  }
 0xbf5   : > { %v1299_v63 = vpop.f32.mrb[34].mxu1  ;;  %v2360_v56 = vld [vmem:[%s2974_s4 + $0x68] sm:$0xff]  }
 0xbf6   : > { %v1300_v57 = vadd.f32 %v1299_v63, %v1246_v51  ;;  %v2251_v58 = vpop.f32.mrb[35].mxu1  ;;  %v1303_v59 = vadd.f32 %v1297_v55, %v2596_v3  ;;  %v2357_v51 = vld [vmem:[%s2974_s4 + $0xe0] sm:$0xff]   ;;  %v2361_v63 = vld [vmem:[%s2974_s4 + $0xe8] sm:$0xff]  }
 0xbf7   : > { %v2359_v55 = vld [vmem:[%s2974_s4 + $0xa0] sm:$0xff]   ;;  %v2363_v58 = vld [vmem:[%s2974_s4 + $0xa8] sm:$0xff]  }
 0xbf8   : > { %v1307_v60 = vsel %vm274_vm1, %v1303_v59, 0.0  ;;  %v1304_v61 = vadd.f32 %v1300_v57, %v2598_v4  ;;  %v2330_v4 = vld [vmem:[%s2973_s3 + $0x4] ss:$16 sps:$4 sm:$0xff]   ;;  %v2362_v57 = vld [vmem:[%s2974_s4 + $0x28] sm:$0xff]  }
 0xbf9   : > { %1308 = vadd.xlane.f32.xlu1 %v1307_v60  ;;  %1413 = vmatprep.subr.bf16.mxu0 %v2330_v4  ;;  %v2365_v60 = vld [vmem:[%s2974_s4 + $0xf0] sm:$0xff]  }
 0xbfa   : > { %v1310_v62 = vsel %vm274_vm1, %v1304_v61, 0.0  ;;  %1414 = vmatpush1.bf16.msra.mxu0 %v2328_v11 }
 0xbfb   : > { %1311 = vadd.xlane.f32.xlu0 %v1310_v62  ;;  %1415 = vmatprep.subr.bf16.mxu0 %v2336_v53  ;;  %v2367_v62 = vld [vmem:[%s2974_s4 + $0xb0] sm:$0xff]  }
 0xbfe   : > { %1416 = vmatpush1.bf16.msra.mxu0 %v2334_v52 }
 0xbff   : > { %2096 = vmatprep.subr.bf16.mxu0 %v2340_v18 }
 0xc86   : > { %v1309_v0 = vpop.xlane.xlu1 %1308 }
 0xc87   : > { %v1314_v2 = vmul.f32 0.03125, %v1309_v0  ;;  %v2368_v0 = vld [vmem:[%s2974_s4 + $0x78] sm:$0xff]  }
 0xc88   : > { %v1312_v5 = vpop.xlane.xlu0 %1311 }
 0xc89   : > { %v1316_v6 = vsub.f32 %v1303_v59, %v1314_v2  ;;  %v1315_v7 = vmul.f32 0.03125, %v1312_v5  ;;  %v2364_v59 = vld [vmem:[%s2974_s4 + $0x70] sm:$0xff]   ;;  %v2369_v2 = vld [vmem:[%s2974_s4 + $0xf8] sm:$0xff]  }
 0xc8a   : > { %v2370_v5 = vld [vmem:[%s2974_s4 + $0x38] sm:$0xff]  }
 0xc8b   : > { %v1317_v8 = vsub.f32 %v1304_v61, %v1315_v7  ;;  %v1318_v9 = vmul.f32 %v1316_v6, %v1316_v6  ;;  %v2366_v61 = vld [vmem:[%s2974_s4 + $0x30] sm:$0xff]   ;;  %v1350_v7 = vlaneseq }
 0xc8d   : > { %v1320_v10 = vsel %vm274_vm1, %v1318_v9, 0.0  ;;  %v1319_v12 = vmul.f32 %v1317_v8, %v1317_v8 }
 0xc8e   : > { %1321 = vadd.xlane.f32.xlu0 %v1320_v10 }
 0xc8f   : > { %v1323_v3 = vsel %vm274_vm1, %v1319_v12, 0.0  ;;  %v2009_v12 = vld [vmem:[%s2975_s5 + $0x4] ss:$8 sm:$0xf] }
 0xc90   : > { %1324 = vadd.xlane.f32.xlu1 %v1323_v3 }
 0xd1b   : > { %v1322_v20 = vpop.xlane.xlu0 %1321 }
 0xd1c   : > { %v1326_v21 = vmul.f32 0.03125, %v1322_v20 }
 0xd1d   : > { %v1325_v22 = vpop.xlane.xlu1 %1324 }
 0xd1e   : > { %v1328_v23 = vadd.f32 1e-05, %v1326_v21  ;;  %v1327_v24 = vmul.f32 0.03125, %v1325_v22 }
 0xd20   : > { %2404 = vrsqrt.f32 %v1328_v23  ;;  %v1329_v14 = vadd.f32 1e-05, %v1327_v24 }
 0xd22   : > { %2406 = vrsqrt.f32 %v1329_v14 }
 0xd2a   : > { %v2405_v25 = vpop.eup %2404 }
 0xd2b   : > { %v1332_v27 = vmul.f32 %v2405_v25, %v1316_v6  ;;  %v2371_v6 = vld [vmem:[%s2974_s4 + $0xb8] sm:$0xff]  }
 0xd2c   : > { %v2407_v28 = vpop.eup %2406 }
 0xd2d   : > { %v1334_v29 = vmul.f32 %v1332_v27, %v1305_v26  ;;  %v1333_v30 = vmul.f32 %v2407_v28, %v1317_v8  ;;  %v1351_v8 = vshrl.u32 %v1350_v7, 7 }
 0xd2f   : > { %v1335_v32 = vmul.f32 %v1333_v30, %v1305_v26  ;;  %v2800_v33 = vadd.f32 %v1334_v29, %v1306_v31  ;;  %v1352_v9 = vsub.s32 0, %v1351_v8  ;;  %v1360_v10 = vsub.s32 2, %v1351_v8 }
 0xd30   : > { %v1356_v3 = vsub.s32 1, %v1351_v8  ;;  %v1364_v4 = vsub.s32 3, %v1351_v8 }
 0xd31   : > { %v2802_v34 = vadd.f32 %v1335_v32, %v1306_v31  ;;  %v1353_v13 = vrot.slane %v2009_v12, %v1352_v9  ;;  %v1361_v11 = vrot.slane %v2009_v12, %v1360_v10 }
 0xd32   : > { %v1357_v48 = vrot.slane %v2009_v12, %v1356_v3  ;;  %v1365_v52 = vrot.slane %v2009_v12, %v1364_v4 }
 0xd33   : > { %v1346_v37 = vpack.c.bf16 %v2802_v34, %v2800_v33 }
 0xd35   : > { %2018 = vmatmul.mubr.msk.bf16.vlgmr.msra.gmra.mrb[36].mxu0 %vm274_vm1, %v1346_v37  ;;  %2019 = vmatmul.mubr.msk.bf16.vlgmr.msra.gmra.mrb[36].mxu1 %vm274_vm1, %v1346_v37 }
 0xd36   : > { %2097 = vmatpush3.bf16.msra.mxu0 %v2342_v35  ;;  %2119 = vmatpush3.bf16.msra.mxu1 %v2343_v36 }
 0xd37   : > { %2098 = vmatprep.subr.bf16.mxu0 %v2344_v1  ;;  %2120 = vmatprep.subr.bf16.mxu1 %v2345_v38 }
 0xd3a   : > { %2099 = vmatpush3.bf16.msra.mxu0 %v2346_v39  ;;  %2121 = vmatpush3.bf16.msra.mxu1 %v2347_v40 }
 0xd3b   : > { %2100 = vmatprep.subr.bf16.mxu0 %v2348_v41  ;;  %2122 = vmatprep.subr.bf16.mxu1 %v2349_v42 }
 0xd3e   : > { %2101 = vmatpush3.bf16.msra.mxu0 %v2350_v43  ;;  %2123 = vmatpush3.bf16.msra.mxu1 %v2351_v44  ;;  %v1575_v44 = vld [vmem:[%s2975_s5 + $0x5] ss:$0 sm:$0xff] }
 0xd3f   : > { %2102 = vmatprep.subr.bf16.mxu0 %v2352_v45  ;;  %2124 = vmatprep.subr.bf16.mxu1 %v2353_v46 }
 0xd42   : > { %2103 = vmatpush3.bf16.msra.mxu0 %v2354_v47  ;;  %2125 = vmatpush3.bf16.msra.mxu1 %v2355_v49 }
 0xd43   : > { %2104 = vmatprep.subr.bf16.mxu0 %v2356_v50  ;;  %2126 = vmatprep.subr.bf16.mxu1 %v2357_v51 }
 0xd46   : > { %2105 = vmatpush3.bf16.msra.mxu0 %v2358_v54  ;;  %2127 = vmatpush3.bf16.msra.mxu1 %v2359_v55 }
 0xd47   : > { %2106 = vmatprep.subr.bf16.mxu0 %v2360_v56  ;;  %2128 = vmatprep.subr.bf16.mxu1 %v2361_v63 }
 0xd4a   : > { %2107 = vmatpush3.bf16.msra.mxu0 %v2362_v57  ;;  %2129 = vmatpush3.bf16.msra.mxu1 %v2363_v58 }
 0xd4b   : > { %2108 = vmatprep.subr.bf16.mxu0 %v2364_v59  ;;  %2130 = vmatprep.subr.bf16.mxu1 %v2365_v60 }
 0xd4e   : > { %2109 = vmatpush3.bf16.msra.mxu0 %v2366_v61  ;;  %2131 = vmatpush3.bf16.msra.mxu1 %v2367_v62 }
 0xd4f   : > { %2110 = vmatprep.subr.bf16.mxu0 %v2368_v0  ;;  %2132 = vmatprep.subr.bf16.mxu1 %v2369_v2 }
 0xd52   : > { %2111 = vmatpush3.bf16.msra.mxu0 %v2370_v5  ;;  %2133 = vmatpush3.bf16.msra.mxu1 %v2371_v6 }
 0xe08   : > { %v1447_v53 = vpop.f32.mrb[36].mxu0  ;;  %v1490_v15 = vpop.f32.mrb[36].mxu1 }
 0xe09   : > { %v1448_v16 = vadd.f32 %v1447_v53, %v1353_v13  ;;  %v1491_v17 = vadd.f32 %v1490_v15, %v1361_v11  ;;  %v1449_v18 = vpop.f32.mrb[37].mxu0  ;;  %v1492_v19 = vpop.f32.mrb[37].mxu1 }
 0xe0a   : > { %v1450_v20 = vadd.f32 %v1449_v18, %v1357_v48  ;;  %v1493_v21 = vadd.f32 %v1492_v19, %v1365_v52  ;;  %v1451_v22 = vpop.f32.mrb[38].mxu0  ;;  %v1494_v23 = vpop.f32.mrb[38].mxu1  ;;  %v1853_v19 = vld [vmem:[%s2975_s5 + $0x7] ss:$0 sm:$0xff] }
 0xe0b   : > { %v1452_v24 = vadd.f32 %v1451_v22, %v1353_v13  ;;  %v1495_v14 = vadd.f32 %v1494_v23, %v1361_v11  ;;  %v1453_v25 = vpop.f32.mrb[39].mxu0  ;;  %v1496_v26 = vpop.f32.mrb[39].mxu1  ;;  %v1499_v29 = vmax.f32 %v1448_v16, 0.0  ;;  %v1501_v30 = vmax.f32 %v1491_v17, 0.0  ;;  %v1852_v16 = vld [vmem:[%s2975_s5 + $0x6] ss:$0 sm:$0xff] }
 0xe0c   : > { %v1454_v27 = vadd.f32 %v1453_v25, %v1357_v48  ;;  %v1497_v28 = vadd.f32 %v1496_v26, %v1365_v52  ;;  %v1500_v35 = vmax.f32 %v1450_v20, 0.0  ;;  %v1502_v36 = vmax.f32 %v1493_v21, 0.0 }
 0xe0d   : > { %v1503_v31 = vmax.f32 %v1452_v24, 0.0  ;;  %v1505_v32 = vmax.f32 %v1495_v14, 0.0 }
 0xe0e   : > { %v1504_v37 = vmax.f32 %v1454_v27, 0.0  ;;  %v1506_v1 = vmax.f32 %v1497_v28, 0.0 }
 0xe0f   : > { %v1571_v38 = vpack.c.bf16 %v1503_v31, %v1499_v29  ;;  %v1573_v39 = vpack.c.bf16 %v1505_v32, %v1501_v30 }
 0xe10   : > { %v1572_v40 = vpack.c.bf16 %v1504_v37, %v1500_v35  ;;  %v1574_v41 = vpack.c.bf16 %v1506_v1, %v1502_v36 }
 0xe12   : > { %1800 = vmatprep.mubr.bf16.mxu0 %v1572_v40  ;;  %1841 = vmatprep.mubr.bf16.mxu1 %v1574_v41 }
 0xe13   : > { %1801 = vmatmul.mubr.bf16.vlgmr.msra.gmra.mrb[40].mxu0 %v1571_v38  ;;  %1842 = vmatmul.mubr.bf16.vlgmr.msra.gmra.mrb[40].mxu1 %v1573_v39 }
 0xee6   : > { %v2112_v42 = vpop.f32.mrb[40].mxu0  ;;  %v2134_v43 = vpop.f32.mrb[40].mxu1 }
 0xee7   : > { %v2113_v45 = vpop.f32.mrb[41].mxu0  ;;  %v2135_v46 = vpop.f32.mrb[41].mxu1 }
 0xee8   : > { %v2114_v47 = vadd.f32 %v2113_v45, %v2112_v42  ;;  %v2136_v49 = vadd.f32 %v2135_v46, %v2134_v43  ;;  %v2115_v50 = vpop.f32.mrb[42].mxu0  ;;  %v2137_v51 = vpop.f32.mrb[42].mxu1 }
 0xee9   : > { %v2116_v54 = vpop.f32.mrb[43].mxu0  ;;  %v2138_v55 = vpop.f32.mrb[43].mxu1 }
 0xeea   : > { %v1803_v56 = vadd.f32 %v2114_v47, %v1575_v44  ;;  %v2117_v63 = vadd.f32 %v2116_v54, %v2115_v50  ;;  %v2139_v57 = vadd.f32 %v2138_v55, %v2137_v51 }
 0xeec   : > { %v1844_v58 = vadd.f32 %v2136_v49, %v1803_v56  ;;  %v1806_v59 = vadd.f32 %v2117_v63, %v1575_v44 }
 0xeee   : > { %v1847_v60 = vadd.f32 %v2139_v57, %v1806_v59  ;;  %v1850_v61 = vadd.f32 %v1844_v58, %v2800_v33 }
 0xef0   : > { %v1854_v62 = vsel %vm274_vm1, %v1850_v61, 0.0  ;;  %v1851_v0 = vadd.f32 %v1847_v60, %v2802_v34 }
 0xef1   : > { %1855 = vadd.xlane.f32.xlu0 %v1854_v62 }
 0xef2   : > { %v1857_v2 = vsel %vm274_vm1, %v1851_v0, 0.0 }
 0xef3   : > { %1858 = vadd.xlane.f32.xlu1 %v1857_v2 }
 0xf7e   : > { %v1856_v5 = vpop.xlane.xlu0 %1855 }
 0xf7f   : > { %v1860_v6 = vmul.f32 0.03125, %v1856_v5 }
 0xf80   : > { %v1859_v7 = vpop.xlane.xlu1 %1858 }
 0xf81   : > { %v1862_v8 = vsub.f32 %v1850_v61, %v1860_v6  ;;  %v1861_v9 = vmul.f32 0.03125, %v1859_v7 }
 0xf83   : > { %v1863_v10 = vsub.f32 %v1851_v0, %v1861_v9  ;;  %v1864_v12 = vmul.f32 %v1862_v8, %v1862_v8 }
 0xf85   : > { %v1866_v3 = vsel %vm274_vm1, %v1864_v12, 0.0  ;;  %v1865_v4 = vmul.f32 %v1863_v10, %v1863_v10 }
 0xf86   : > { %1867 = vadd.xlane.f32.xlu0 %v1866_v3 }
 0xf87   : > { %v1869_v33 = vsel %vm274_vm1, %v1865_v4, 0.0 }
 0xf88   : > { %1870 = vadd.xlane.f32.xlu1 %v1869_v33 }
0x1013   : > { %v1868_v13 = vpop.xlane.xlu0 %1867 }
0x1014   : > { %v1872_v34 = vmul.f32 0.03125, %v1868_v13 }
0x1015   : > { %v1871_v11 = vpop.xlane.xlu1 %1870 }
0x1016   : > { %v1874_v48 = vadd.f32 1e-05, %v1872_v34  ;;  %v1873_v52 = vmul.f32 0.03125, %v1871_v11 }
0x1018   : > { %2408 = vrsqrt.f32 %v1874_v48  ;;  %v1875_v53 = vadd.f32 1e-05, %v1873_v52 }
0x101a   : > { %2410 = vrsqrt.f32 %v1875_v53 }
0x1022   : > { %v2409_v15 = vpop.eup %2408 }
0x1023   : > { %v1878_v17 = vmul.f32 %v2409_v15, %v1862_v8 }
0x1024   : > { %v2411_v18 = vpop.eup %2410 }
0x1025   : > { %v1880_v20 = vmul.f32 %v1878_v17, %v1852_v16  ;;  %v1879_v21 = vmul.f32 %v2411_v18, %v1863_v10 }
0x1027   : > { %v1882_v22 = vadd.f32 %v1880_v20, %v1853_v19  ;;  %v1881_v23 = vmul.f32 %v1879_v21, %v1852_v16 }
0x1029   : > { %v1884_v24 = vsel %vm274_vm1, %v1882_v22, 0.0  ;;  %v1883_v14 = vadd.f32 %v1881_v23, %v1853_v19 }
0x102a   : > { %v1885_v25 = vrot.slane %v1884_v24, 4 }
0x102b   : > { %v1891_v26 = vsel %vm274_vm1, %v1883_v14, 0.0 }
0x102c   : > { %v1886_v27 = vadd.f32 %v1885_v25, %v1884_v24  ;;  %v1892_v28 = vrot.slane %v1891_v26, 4 }
0x102e   : > { %v1893_v29 = vadd.f32 %v1892_v28, %v1891_v26  ;;  %v1887_v30 = vrot.slane %v1886_v27, 2 }
0x1030   : > { %v1888_v31 = vadd.f32 %v1887_v30, %v1886_v27  ;;  %v1894_v32 = vrot.slane %v1893_v29, 2 }
0x1032   : > { %v1889_v35 = vrot.slane %v1888_v31, 1  ;;  %v1895_v36 = vadd.f32 %v1894_v32, %v1893_v29 }
0x1034   : > { %v1890_v37 = vadd.f32 %v1889_v35, %v1888_v31  ;;  %v1896_v1 = vrot.slane %v1895_v36, 1 }
0x1036   : > { %v1897_v38 = vadd.f32 %v1896_v1, %v1895_v36  ;;  %v1899_v39 = vmul.f32 0.125, %v1890_v37 }
0x1038   : > { %v1900_v40 = vmul.f32 0.125, %v1897_v38  ;;  %1902 = vst.msk [vmem:[%s245_s28] sm:$0x1] %vm1901_vm6, %v1899_v39 }
0x103a   : > { %1903 = vst.msk [vmem:[%s245_s28 + $0x1] sm:$0x1] %vm1901_vm6, %v1900_v40 }
0x103b   : > { %2425 = shalt.err (!%p2422_p3)
}
0x103c   : > { %s2426_s16 = scalar_lea.hbm %s2923_s11, 32  ;;  %s2430_s20 = scalar_lea.hbm %s2976_s6, 64 }
0x103d   : > { %p2427_p4 = scmp.ne.s32.totalorder %s2923_s11, %s2426_s16  ;;  %p2431_p9 = scmp.lt.u32.totalorder %s2923_s11, %s2976_s6 }
0x103e   : > { %p2432_p10 = scmp.lt.u32.totalorder %s2430_s20, %s2426_s16  ;;  %p2434_p12 = scmp.lt.u32.totalorder %s2426_s16, %s2923_s11 }
0x103f   : > { %p2428_p7 = pnand %p2427_p4, %p2568_p5 }
0x1040   : > { %p2433_p11 = por %p2432_p10, %p2431_p9 }
0x1041   : > { %p2429_p8 = pneg %p2428_p7 }
0x1042   : > { %p2435_p13 = por %p2434_p12, %p2433_p11 }
0x1044   : > { %p2436_p0 = pnand %p2435_p13, %p2429_p8 }
0x1046   : > { %2439 = shalt.err (!%p2436_p0)
}
0x1047   : > { %s2494_s9 = smov 1  }
0x1048   : > { %2252 = dma.vmem_to_hbm [thread:$0]  (%p2568_p5), %s2925_s29, 32, %s2923_s11, %s2927_s12, %s2490_s17, %s2490_s17, %s2494_s9  }
0x1049 PF: > { %p2258_p1 = scmp.ge.s32.totalorder %s2474_s24, 2  ;;  %s1933_s10 = sand.u32 1, %s2462_s21  }
0x104a   : > { %s1934_s25 = scalar_lea.sflag [#allocation3], %s1933_s10 }
0x104b   : > { %p2255_p2 = pnand %p2258_p1, %p2572_p6 }
0x104d   : > { %2457 = dma.done.wait (!%p2255_p2), %s1934_s25, 32  }
0x104e   : > { %2459 = vsyncadd (!%p2255_p2), %s1934_s25, 4294967264  ;;  %p16_p3 = scmp.ge.s32.totalorder %s2555_s27, 4   ;;  %s2979_s21 = smov %s2466_s22 }
0x104f   : > { %s2980_s22 = smov %s2470_s23  ;;  %s2981_s23 = smov %s2566_s30 }
0x1050   : > { %s2982_s24 = smov %s2555_s27  ;;  %18 = sbr.rel (!%p16_p3) target bundleno = 3 (0x3), region = 80 }
0x1057   :  { %1939 = vsyncpa [#allocation3], 1 }
0x1058   :  { %1941 = vsyncpa [#allocation3 + $0x1], 1 }

</bundles_post_ra>
